<compile_context>
chip_gen: v5e
topology: v5e:2x2
jax: 0.10.0
libtpu: 0.0.40
codegen_flags: <defaults>
</compile_context>

<pallas_src>
import numpy as np

import jax
import jax.numpy as jnp
from jax.experimental import pallas as pl
from jax.experimental.pallas import tpu as pltpu

LEAKY_SLOPE = 0.01   # nn.LeakyReLU default
BN_EPS = 1e-5        # nn.BatchNorm2d default

# (kernel_size, stride) for conv1/conv2/conv3; out channels are 32, 64, 64.
CONV_CFG = ((8, 4), (4, 2), (3, 1))
CONV_COUT = (32, 64, 64)


# ----------------------------------------------------------------------------
# Fused Pallas kernel (one batch tile of `batch_tile` frames per grid step)
# ----------------------------------------------------------------------------
def _full_spec(shape):
    n = len(shape)
    return pl.BlockSpec(shape, lambda i, _n=n: (0,) * _n)


def build_duel_cnn_kernel(output_size, batch_tile):
    A = output_size
    BT = batch_tile
    bf16 = jnp.bfloat16
    f32 = jnp.float32

    def kernel(gall_ref, w1_ref, b1_ref, w2_ref, b2_ref, w3_ref, b3_ref,
               wh1_ref, bh1_ref, wh2_ref, bh2_ref, q_ref, slab1, slab2):
        # ---- conv1 + bn1 + relu -------------------------------------------
        # Single (16*BT, 576) x (576, 128) dot.  Rows = conv2-block * BT + frame,
        # lanes of the result = 4 conv2-parities x 32 channels (s2d-by-2 layout
        # that conv2 consumes directly; placement done via the weight layout).
        a1 = jnp.dot(gall_ref[...], w1_ref[...], preferred_element_type=f32)
        slab1[...] = jnp.maximum(a1 + b1_ref[...], 0.0).astype(bf16)

        # ---- conv2 + bn2 + relu  (2x2 stride-1 conv over slab1) ------------
        # Per output row oh: the 4 taps are lane-concatenated (K = 512) and
        # contracted in a single dot.  LHS rows ordered (ow, frame).
        for oh in range(3):
            lhs = jnp.concatenate(
                [slab1[pl.ds(((oh + di) * 4 + dj) * BT, 3 * BT), :]
                 for di in range(2) for dj in range(2)], axis=1)       # (3BT,512)
            a2 = jnp.dot(lhs, w2_ref[...], preferred_element_type=f32)  # (3BT,64)
            slab2[pl.ds(oh * 3 * BT, 3 * BT), :] = (
                jnp.maximum(a2 + b2_ref[...], 0.0).astype(bf16))

        # ---- conv3 + bn3 + relu  (3x3 conv, 1x1 output) --------------------
        # All 9 taps packed along K (zero-free weight): one (BT,576)x(576,64) dot.
        x3_lhs = jnp.concatenate(
            [slab2[pl.ds(s * BT, BT), :] for s in range(9)], axis=1)    # (BT,576)
        a3 = jnp.dot(x3_lhs, w3_ref[...], preferred_element_type=f32)   # (BT,64)
        x3 = jnp.maximum(a3 + b3_ref[...], 0.0).astype(bf16)

        # ---- dueling head (A and V streams fused) --------------------------
        h = jnp.dot(x3, wh1_ref[...], preferred_element_type=f32) + bh1_ref[...]
        h = jnp.where(h >= 0.0, h, LEAKY_SLOPE * h).astype(bf16)        # (BT,256)
        y = jnp.dot(h, wh2_ref[...], preferred_element_type=f32) + bh2_ref[...]

        lane = jax.lax.broadcasted_iota(jnp.int32, (BT, 128), 1)
        a_mask = lane < A                                               # adv lanes
        ax_mean = jnp.sum(jnp.where(a_mask, y, 0.0),
                          axis=-1, keepdims=True) * (1.0 / A)
        vx = jnp.sum(jnp.where(lane == A, y, 0.0), axis=-1, keepdims=True)
        # q = Vx + (Ax - Ax.mean()) per frame; padded lanes zeroed (lane-dense).
        q_ref[...] = jnp.where(a_mask, vx + (y - ax_mean), 0.0)

    return kernel


# ----------------------------------------------------------------------------
# Wrapper: input prep (space-to-depth + 9-tap lane-concat) + pallas_call
# ----------------------------------------------------------------------------
def _prepare_batch(xs, batch_tile):
    """(B,4,36,36) -> conv1 LHS, rows = block*BT + frame, lanes = tap*64 + ch."""
    B, c, H, W = xs.shape
    hb, wb = H // 4, W // 4                         # 9, 9
    x = jnp.transpose(xs, (0, 2, 3, 1))             # BHWC
    x = x.reshape(B, hb, 4, wb, 4, c).transpose(0, 1, 3, 2, 4, 5)
    x = x.reshape(B, hb, wb, 16 * c)                # s2d-by-4: (B,9,9,64)
    views = [x[:, a:a + 8:2, b:b + 8:2, :].reshape(B, 16, 16 * c)
             for a in range(3) for b in range(3)]
    gall = jnp.concatenate(views, axis=-1)          # (B,16,576), lane-concat taps
    nb = B // batch_tile
    gall = gall.reshape(nb, batch_tile, 16, 576).transpose(0, 2, 1, 3)
    return gall.reshape(nb * 16 * batch_tile, 576).astype(jnp.bfloat16)


def make_duel_cnn_forward(kp, h, w, output_size, batch_tile=8):
    # TODO(synk): the fused kernel is specialized to 36x36 frames (conv3 output
    # is 1x1); other sizes need a re-derived block geometry.
    assert h == 36 and w == 36, "fused kernel specialized to 36x36 frames"
    assert batch_tile % 8 == 0, "batch tile must keep slab slices 8-aligned"
    A = output_size
    BT = batch_tile
    kernel = build_duel_cnn_kernel(A, BT)
    weight_args = (kp["w1"], kp["b1"], kp["w2"], kp["b2"], kp["w3"], kp["b3"],
                   kp["wh1"], kp["bh1"], kp["wh2"], kp["bh2"])

    def _run(xs):                       # xs: (B_pad,4,36,36), B_pad % BT == 0
        B = xs.shape[0]
        nb = B // BT
        gall = _prepare_batch(xs, BT)
        call = pl.pallas_call(
            kernel,
            out_shape=jax.ShapeDtypeStruct((B, 128), jnp.float32),
            grid=(nb,),
            in_specs=[pl.BlockSpec((16 * BT, 576), lambda n: (n, 0))]
                     + [_full_spec(a.shape) for a in weight_args],
            out_specs=pl.BlockSpec((BT, 128), lambda n: (n, 0)),
            scratch_shapes=[pltpu.VMEM((16 * BT, 128), jnp.bfloat16),  # conv1 out
                            pltpu.VMEM((9 * BT, 64), jnp.bfloat16)],   # conv2 out
            compiler_params=pltpu.CompilerParams(
                dimension_semantics=("parallel",)),
        )
        return call(gall, *weight_args)

    @jax.jit
    def forward_batch(xs):
        """(B, 4, 36, 36) -> (B, output_size): per-frame DuelCNN.forward()."""
        B = xs.shape[0]
        B_pad = ((B + BT - 1) // BT) * BT
        if B_pad != B:
            xs = jnp.concatenate(
                [xs, jnp.zeros((B_pad - B,) + xs.shape[1:], xs.dtype)], axis=0)
        q = _run(xs)
        return q[:B, :A]

    @jax.jit
    def forward(x):
        """Original module semantics: (4, H, W) -> (1, output_size)."""
        return forward_batch(x[None])

    return forward, forward_batch


# ----------------------------------------------------------------------------
# Parameters: PyTorch-layout init + host-side rearrangement into kernel layouts
# ----------------------------------------------------------------------------
def init_torch_like_params(key, output_size):
    """Random parameters in the PyTorch module's native layouts."""
    keys = jax.random.split(key, 32)
    it = iter(keys)

    def nrm(shape, scale=0.05):
        return scale * jax.random.normal(next(it), shape, dtype=jnp.float32)

    p = {}
    cin = 4
    for i, (cout, (k, _s)) in enumerate(zip(CONV_COUT, CONV_CFG), start=1):
        p[f"conv{i}_w"] = nrm((cout, cin, k, k))
        p[f"conv{i}_b"] = nrm((cout,))
        p[f"bn{i}_gamma"] = 1.0 + nrm((cout,), 0.1)
        p[f"bn{i}_beta"] = nrm((cout,), 0.1)
        p[f"bn{i}_mean"] = nrm((cout,), 0.1)
        p[f"bn{i}_var"] = 1.0 + jnp.abs(nrm((cout,), 0.1))
        cin = cout
    feat = 64  # conv3 output is 1x1x64 for 36x36 input
    p["Alinear1_w"] = nrm((128, feat)); p["Alinear1_b"] = nrm((128,))
    p["Alinear2_w"] = nrm((output_size, 128)); p["Alinear2_b"] = nrm((output_size,))
    p["Vlinear1_w"] = nrm((128, feat)); p["Vlinear1_b"] = nrm((128,))
    p["Vlinear2_w"] = nrm((1, 128)); p["Vlinear2_b"] = nrm((1,))
    return p


def prepare_kernel_params(p, output_size):
    """Fold conv bias + BatchNorm (eval) into weights and permute everything
    into the fused kernel's bf16 layouts (done once, on the host)."""
    A = output_size
    assert A < 127
    np_p = {k: np.asarray(v, np.float32) for k, v in p.items()}

    def fold(i):
        w, b = np_p[f"conv{i}_w"], np_p[f"conv{i}_b"]
        scale = np_p[f"bn{i}_gamma"] / np.sqrt(np_p[f"bn{i}_var"] + BN_EPS)
        return w * scale[:, None, None, None], \
            (b - np_p[f"bn{i}_mean"]) * scale + np_p[f"bn{i}_beta"]

    # conv1: stride-4 conv -> 2x2 stride-1 conv over s2d-by-4 input; the four
    # conv2 parities are placed in disjoint 32-lane output blocks.  K rows are
    # ordered tap(a,b)*64 + (pi,pj,cin) to match the wrapper's lane layout.
    w1e, b1e = fold(1)                                   # (32,4,8,8), (32,)
    t = w1e.transpose(2, 3, 1, 0)                        # [kh, kw, cin, cout]
    t = t.reshape(2, 4, 2, 4, 4, 32).transpose(0, 2, 1, 3, 4, 5)
    w1s = t.reshape(2, 2, 64, 32)                        # [di, dj, (pi,pj,cin), cout]
    w1c = np.zeros((3, 3, 64, 128), np.float32)
    for a in range(3):
        for b in range(3):
            for qi in range(2):
                for qj in range(2):
                    di, dj = a - qi, b - qj
                    if 0 <= di < 2 and 0 <= dj < 2:
                        col = (qi * 2 + qj) * 32
                        w1c[a, b, :, col:col + 32] = w1s[di, dj]
    w1k = w1c.reshape(9 * 64, 128)
    b1k = np.tile(b1e, 4)[None, :]                       # (1, 128)

    # conv2: stride-2 conv -> 2x2 stride-1 conv over conv1's s2d-by-2 output.
    # Zero-free: K = tap(di,dj)*128 + parity(qi,qj)*32 + cin, N = 64.
    w2e, b2e = fold(2)                                   # (64,32,4,4), (64,)
    t = w2e.transpose(2, 3, 1, 0)                        # [kh, kw, cin, cout]
    t = t.reshape(2, 2, 2, 2, 32, 64).transpose(0, 2, 1, 3, 4, 5)
    w2k = t.reshape(4 * 128, 64)
    b2k = b2e[None, :]                                   # (1, 64)

    # conv3: 3x3 stride-1 conv, 1x1 output; all 9 taps packed along K (zero-free).
    w3e, b3e = fold(3)                                   # (64,64,3,3), (64,)
    w3k = w3e.transpose(2, 3, 1, 0).reshape(9 * 64, 64)  # K = (di,dj)*64 + cin
    b3k = b3e[None, :]                                   # (1, 64)

    # Dueling head, both streams concatenated (zero rows trimmed from wh1).
    # Hidden lanes [0,128)=A, [128,256)=V; output lanes [0,A)=advantage, lane A=value.
    wh1 = np.concatenate([np_p["Alinear1_w"].T, np_p["Vlinear1_w"].T], axis=1)  # (64,256)
    bh1 = np.concatenate([np_p["Alinear1_b"], np_p["Vlinear1_b"]])[None, :]
    wh2 = np.zeros((256, 128), np.float32)
    wh2[:128, :A] = np_p["Alinear2_w"].T
    wh2[128:, A] = np_p["Vlinear2_w"][0]
    bh2 = np.zeros((1, 128), np.float32)
    bh2[0, :A] = np_p["Alinear2_b"]
    bh2[0, A] = np_p["Vlinear2_b"][0]

    bf = lambda v: jnp.asarray(v, jnp.bfloat16)
    f32 = lambda v: jnp.asarray(v, jnp.float32)
    return dict(w1=bf(w1k), b1=f32(b1k), w2=bf(w2k), b2=f32(b2k),
                w3=bf(w3k), b3=f32(b3k),
                wh1=bf(wh1), bh1=f32(bh1), wh2=bf(wh2), bh2=f32(bh2))


# ----------------------------------------------------------------------------
# Pure-JAX reference (f32, eval-mode BN) for validation
# ----------------------------------------------------------------------------
def reference_forward(p, x):
    z = x[None].astype(jnp.float32)                      # (1, 4, H, W)
    for i, (_k, s) in enumerate(CONV_CFG, start=1):
        z = jax.lax.conv_general_dilated(
            z, p[f"conv{i}_w"], window_strides=(s, s), padding="VALID",
            dimension_numbers=("NCHW", "OIHW", "NCHW"))
        z = z + p[f"conv{i}_b"][None, :, None, None]
        scale = p[f"bn{i}_gamma"] / jnp.sqrt(p[f"bn{i}_var"] + BN_EPS)
        z = (z - p[f"bn{i}_mean"][None, :, None, None]) * scale[None, :, None, None] \
            + p[f"bn{i}_beta"][None, :, None, None]
        z = jnp.maximum(z, 0.0)
    flat = z.reshape(1, -1)
    leaky = lambda u: jnp.where(u >= 0, u, LEAKY_SLOPE * u)
    ax = leaky(flat @ p["Alinear1_w"].T + p["Alinear1_b"]) @ p["Alinear2_w"].T \
        + p["Alinear2_b"]
    vx = leaky(flat @ p["Vlinear1_w"].T + p["Vlinear1_b"]) @ p["Vlinear2_w"].T \
        + p["Vlinear2_b"]
    return vx + (ax - jnp.mean(ax))


if __name__ == "__main__":
    # Smallest spatial size compatible with the conv stack: 36 -> 8 -> 3 -> 1.
    H = W = 36
    OUTPUT_SIZE = 4
    BATCH = 16          # 2 batch tiles of 8 frames -> grid=(2,), "parallel"

    key = jax.random.PRNGKey(0)
    kp_key, kx_key = jax.random.split(key)

    torch_params = init_torch_like_params(kp_key, OUTPUT_SIZE)
    kernel_params = prepare_kernel_params(torch_params, OUTPUT_SIZE)
    xs = jax.random.normal(kx_key, (BATCH, 4, H, W), dtype=jnp.float32)

    forward, forward_batch = make_duel_cnn_forward(
        kernel_params, H, W, OUTPUT_SIZE, batch_tile=8)

    q = jax.block_until_ready(forward_batch(xs))
    assert q.shape == (BATCH, OUTPUT_SIZE), q.shape
    assert bool(jnp.all(jnp.isfinite(q)))

    # Original single-frame semantics: (4,H,W) -> (1, output_size).
    q1 = jax.block_until_ready(forward(xs[0]))
    assert q1.shape == (1, OUTPUT_SIZE), q1.shape

    # Validate against the pure-JAX reference (bf16 matmuls => loose tolerance).
    q_ref = jax.block_until_ready(
        jax.vmap(lambda xi: reference_forward(torch_params, xi)[0])(xs))
    np.testing.assert_allclose(np.asarray(q), np.asarray(q_ref),
                               rtol=0.15, atol=0.03)
    np.testing.assert_allclose(np.asarray(q1[0]), np.asarray(q_ref[0]),
                               rtol=0.15, atol=0.03)

    print("KERNEL_OK")
</pallas_src>

<mosaic_0001>
module attributes {stable_mosaic.version = 11 : i64} {
  func.func @kernel(%arg0: i32, %arg1: memref<128x576xbf16, #tpu.memory_space<vmem>>, %arg2: memref<576x128xbf16, #tpu.memory_space<vmem>>, %arg3: memref<1x128xf32, #tpu.memory_space<vmem>>, %arg4: memref<512x64xbf16, #tpu.memory_space<vmem>>, %arg5: memref<1x64xf32, #tpu.memory_space<vmem>>, %arg6: memref<576x64xbf16, #tpu.memory_space<vmem>>, %arg7: memref<1x64xf32, #tpu.memory_space<vmem>>, %arg8: memref<64x256xbf16, #tpu.memory_space<vmem>>, %arg9: memref<1x256xf32, #tpu.memory_space<vmem>>, %arg10: memref<256x128xbf16, #tpu.memory_space<vmem>>, %arg11: memref<1x128xf32, #tpu.memory_space<vmem>>, %arg12: memref<8x128xf32, #tpu.memory_space<vmem>>, %arg13: memref<128x128xbf16, #tpu.memory_space<vmem>>, %arg14: memref<72x64xbf16, #tpu.memory_space<vmem>>) attributes {dimension_semantics = [#tpu.dimension_semantics<parallel>], iteration_bounds = array<i64: 2>, scalar_prefetch = 0 : i64, scratch_operands = 2 : i64, tpu.core_type = #tpu.core_type<tc>, window_params = [{transform_indices = @transform_0, window_bounds = array<i64: 128, 576>}, {pipeline_mode = #tpu.pipeline_mode<synchronous>, transform_indices = @transform_1, window_bounds = array<i64: 576, 128>}, {pipeline_mode = #tpu.pipeline_mode<synchronous>, transform_indices = @transform_2, window_bounds = array<i64: 1, 128>}, {pipeline_mode = #tpu.pipeline_mode<synchronous>, transform_indices = @transform_3, window_bounds = array<i64: 512, 64>}, {pipeline_mode = #tpu.pipeline_mode<synchronous>, transform_indices = @transform_4, window_bounds = array<i64: 1, 64>}, {pipeline_mode = #tpu.pipeline_mode<synchronous>, transform_indices = @transform_5, window_bounds = array<i64: 576, 64>}, {pipeline_mode = #tpu.pipeline_mode<synchronous>, transform_indices = @transform_6, window_bounds = array<i64: 1, 64>}, {pipeline_mode = #tpu.pipeline_mode<synchronous>, transform_indices = @transform_7, window_bounds = array<i64: 64, 256>}, {pipeline_mode = #tpu.pipeline_mode<synchronous>, transform_indices = @transform_8, window_bounds = array<i64: 1, 256>}, {pipeline_mode = #tpu.pipeline_mode<synchronous>, transform_indices = @transform_9, window_bounds = array<i64: 256, 128>}, {pipeline_mode = #tpu.pipeline_mode<synchronous>, transform_indices = @transform_10, window_bounds = array<i64: 1, 128>}, {transform_indices = @transform_11, window_bounds = array<i64: 8, 128>}]} {
    %c0 = arith.constant 0 : index
    %c0_0 = arith.constant 0 : index
    %0 = vector.load %arg1[%c0, %c0_0] : memref<128x576xbf16, #tpu.memory_space<vmem>>, vector<128x576xbf16>
    %c0_1 = arith.constant 0 : index
    %c0_2 = arith.constant 0 : index
    %1 = vector.load %arg2[%c0_1, %c0_2] : memref<576x128xbf16, #tpu.memory_space<vmem>>, vector<576x128xbf16>
    %cst = arith.constant dense<0.000000e+00> : vector<128x128xf32>
    %2 = tpu.matmul %0, %1, %cst {dimension_numbers = #tpu.dot_dimension_numbers<[1], [0], [0], [1], [0, 0, 1, 1], [], []>} : vector<128x576xbf16>, vector<576x128xbf16>, vector<128x128xf32> -> vector<128x128xf32>
    %c0_3 = arith.constant 0 : index
    %c0_4 = arith.constant 0 : index
    %3 = vector.load %arg3[%c0_3, %c0_4] : memref<1x128xf32, #tpu.memory_space<vmem>>, vector<1x128xf32>
    %4 = vector.broadcast %3 : vector<1x128xf32> to vector<128x128xf32>
    %5 = arith.addf %2, %4 : vector<128x128xf32>
    %cst_5 = arith.constant 0.000000e+00 : f32
    %6 = vector.broadcast %cst_5 : f32 to vector<128x128xf32>
    %7 = arith.maximumf %5, %6 : vector<128x128xf32>
    %8 = arith.truncf %7 : vector<128x128xf32> to vector<128x128xbf16>
    %c0_6 = arith.constant 0 : index
    %c0_7 = arith.constant 0 : index
    %9 = vector.load %arg13[%c0_6, %c0_7] : memref<128x128xbf16, #tpu.memory_space<vmem>>, vector<128x128xbf16>
    tpu.vector_store %arg13[%c0_6, %c0_7], %8 {strides = array<i32>} : memref<128x128xbf16, #tpu.memory_space<vmem>>, vector<128x128xbf16>,
    %c0_8 = arith.constant 0 : index
    %c0_9 = arith.constant 0 : index
    %10 = vector.load %arg13[%c0_8, %c0_9] : memref<128x128xbf16, #tpu.memory_space<vmem>>, vector<24x128xbf16>
    %c8 = arith.constant 8 : index
    %c0_10 = arith.constant 0 : index
    %11 = vector.load %arg13[%c8, %c0_10] : memref<128x128xbf16, #tpu.memory_space<vmem>>, vector<24x128xbf16>
    %c32 = arith.constant 32 : index
    %c0_11 = arith.constant 0 : index
    %12 = vector.load %arg13[%c32, %c0_11] : memref<128x128xbf16, #tpu.memory_space<vmem>>, vector<24x128xbf16>
    %c40 = arith.constant 40 : index
    %c0_12 = arith.constant 0 : index
    %13 = vector.load %arg13[%c40, %c0_12] : memref<128x128xbf16, #tpu.memory_space<vmem>>, vector<24x128xbf16>
    %14 = tpu.concatenate %10, %11, %12, %13 in 1 : vector<24x128xbf16>, vector<24x128xbf16>, vector<24x128xbf16>, vector<24x128xbf16> -> vector<24x512xbf16>
    %c0_13 = arith.constant 0 : index
    %c0_14 = arith.constant 0 : index
    %15 = vector.load %arg4[%c0_13, %c0_14] : memref<512x64xbf16, #tpu.memory_space<vmem>>, vector<512x64xbf16>
    %cst_15 = arith.constant dense<0.000000e+00> : vector<24x64xf32>
    %16 = tpu.matmul %14, %15, %cst_15 {dimension_numbers = #tpu.dot_dimension_numbers<[1], [0], [0], [1], [0, 0, 1, 1], [], []>} : vector<24x512xbf16>, vector<512x64xbf16>, vector<24x64xf32> -> vector<24x64xf32>
    %c0_16 = arith.constant 0 : index
    %c0_17 = arith.constant 0 : index
    %17 = vector.load %arg5[%c0_16, %c0_17] : memref<1x64xf32, #tpu.memory_space<vmem>>, vector<1x64xf32>
    %18 = vector.broadcast %17 : vector<1x64xf32> to vector<24x64xf32>
    %19 = arith.addf %16, %18 : vector<24x64xf32>
    %cst_18 = arith.constant 0.000000e+00 : f32
    %20 = vector.broadcast %cst_18 : f32 to vector<24x64xf32>
    %21 = arith.maximumf %19, %20 : vector<24x64xf32>
    %22 = arith.truncf %21 : vector<24x64xf32> to vector<24x64xbf16>
    %c0_19 = arith.constant 0 : index
    %c0_20 = arith.constant 0 : index
    %23 = vector.load %arg14[%c0_19, %c0_20] : memref<72x64xbf16, #tpu.memory_space<vmem>>, vector<24x64xbf16>
    tpu.vector_store %arg14[%c0_19, %c0_20], %22 {strides = array<i32>} : memref<72x64xbf16, #tpu.memory_space<vmem>>, vector<24x64xbf16>,
    %c32_21 = arith.constant 32 : index
    %c0_22 = arith.constant 0 : index
    %24 = vector.load %arg13[%c32_21, %c0_22] : memref<128x128xbf16, #tpu.memory_space<vmem>>, vector<24x128xbf16>
    %c40_23 = arith.constant 40 : index
    %c0_24 = arith.constant 0 : index
    %25 = vector.load %arg13[%c40_23, %c0_24] : memref<128x128xbf16, #tpu.memory_space<vmem>>, vector<24x128xbf16>
    %c64 = arith.constant 64 : index
    %c0_25 = arith.constant 0 : index
    %26 = vector.load %arg13[%c64, %c0_25] : memref<128x128xbf16, #tpu.memory_space<vmem>>, vector<24x128xbf16>
    %c72 = arith.constant 72 : index
    %c0_26 = arith.constant 0 : index
    %27 = vector.load %arg13[%c72, %c0_26] : memref<128x128xbf16, #tpu.memory_space<vmem>>, vector<24x128xbf16>
    %28 = tpu.concatenate %24, %25, %26, %27 in 1 : vector<24x128xbf16>, vector<24x128xbf16>, vector<24x128xbf16>, vector<24x128xbf16> -> vector<24x512xbf16>
    %c0_27 = arith.constant 0 : index
    %c0_28 = arith.constant 0 : index
    %29 = vector.load %arg4[%c0_27, %c0_28] : memref<512x64xbf16, #tpu.memory_space<vmem>>, vector<512x64xbf16>
    %cst_29 = arith.constant dense<0.000000e+00> : vector<24x64xf32>
    %30 = tpu.matmul %28, %29, %cst_29 {dimension_numbers = #tpu.dot_dimension_numbers<[1], [0], [0], [1], [0, 0, 1, 1], [], []>} : vector<24x512xbf16>, vector<512x64xbf16>, vector<24x64xf32> -> vector<24x64xf32>
    %c0_30 = arith.constant 0 : index
    %c0_31 = arith.constant 0 : index
    %31 = vector.load %arg5[%c0_30, %c0_31] : memref<1x64xf32, #tpu.memory_space<vmem>>, vector<1x64xf32>
    %32 = vector.broadcast %31 : vector<1x64xf32> to vector<24x64xf32>
    %33 = arith.addf %30, %32 : vector<24x64xf32>
    %cst_32 = arith.constant 0.000000e+00 : f32
    %34 = vector.broadcast %cst_32 : f32 to vector<24x64xf32>
    %35 = arith.maximumf %33, %34 : vector<24x64xf32>
    %36 = arith.truncf %35 : vector<24x64xf32> to vector<24x64xbf16>
    %c24 = arith.constant 24 : index
    %c0_33 = arith.constant 0 : index
    %37 = vector.load %arg14[%c24, %c0_33] : memref<72x64xbf16, #tpu.memory_space<vmem>>, vector<24x64xbf16>
    tpu.vector_store %arg14[%c24, %c0_33], %36 {strides = array<i32>} : memref<72x64xbf16, #tpu.memory_space<vmem>>, vector<24x64xbf16>,
    %c64_34 = arith.constant 64 : index
    %c0_35 = arith.constant 0 : index
    %38 = vector.load %arg13[%c64_34, %c0_35] : memref<128x128xbf16, #tpu.memory_space<vmem>>, vector<24x128xbf16>
    %c72_36 = arith.constant 72 : index
    %c0_37 = arith.constant 0 : index
    %39 = vector.load %arg13[%c72_36, %c0_37] : memref<128x128xbf16, #tpu.memory_space<vmem>>, vector<24x128xbf16>
    %c96 = arith.constant 96 : index
    %c0_38 = arith.constant 0 : index
    %40 = vector.load %arg13[%c96, %c0_38] : memref<128x128xbf16, #tpu.memory_space<vmem>>, vector<24x128xbf16>
    %c104 = arith.constant 104 : index
    %c0_39 = arith.constant 0 : index
    %41 = vector.load %arg13[%c104, %c0_39] : memref<128x128xbf16, #tpu.memory_space<vmem>>, vector<24x128xbf16>
    %42 = tpu.concatenate %38, %39, %40, %41 in 1 : vector<24x128xbf16>, vector<24x128xbf16>, vector<24x128xbf16>, vector<24x128xbf16> -> vector<24x512xbf16>
    %c0_40 = arith.constant 0 : index
    %c0_41 = arith.constant 0 : index
    %43 = vector.load %arg4[%c0_40, %c0_41] : memref<512x64xbf16, #tpu.memory_space<vmem>>, vector<512x64xbf16>
    %cst_42 = arith.constant dense<0.000000e+00> : vector<24x64xf32>
    %44 = tpu.matmul %42, %43, %cst_42 {dimension_numbers = #tpu.dot_dimension_numbers<[1], [0], [0], [1], [0, 0, 1, 1], [], []>} : vector<24x512xbf16>, vector<512x64xbf16>, vector<24x64xf32> -> vector<24x64xf32>
    %c0_43 = arith.constant 0 : index
    %c0_44 = arith.constant 0 : index
    %45 = vector.load %arg5[%c0_43, %c0_44] : memref<1x64xf32, #tpu.memory_space<vmem>>, vector<1x64xf32>
    %46 = vector.broadcast %45 : vector<1x64xf32> to vector<24x64xf32>
    %47 = arith.addf %44, %46 : vector<24x64xf32>
    %cst_45 = arith.constant 0.000000e+00 : f32
    %48 = vector.broadcast %cst_45 : f32 to vector<24x64xf32>
    %49 = arith.maximumf %47, %48 : vector<24x64xf32>
    %50 = arith.truncf %49 : vector<24x64xf32> to vector<24x64xbf16>
    %c48 = arith.constant 48 : index
    %c0_46 = arith.constant 0 : index
    %51 = vector.load %arg14[%c48, %c0_46] : memref<72x64xbf16, #tpu.memory_space<vmem>>, vector<24x64xbf16>
    tpu.vector_store %arg14[%c48, %c0_46], %50 {strides = array<i32>} : memref<72x64xbf16, #tpu.memory_space<vmem>>, vector<24x64xbf16>,
    %c0_47 = arith.constant 0 : index
    %c0_48 = arith.constant 0 : index
    %52 = vector.load %arg14[%c0_47, %c0_48] : memref<72x64xbf16, #tpu.memory_space<vmem>>, vector<8x64xbf16>
    %c8_49 = arith.constant 8 : index
    %c0_50 = arith.constant 0 : index
    %53 = vector.load %arg14[%c8_49, %c0_50] : memref<72x64xbf16, #tpu.memory_space<vmem>>, vector<8x64xbf16>
    %c16 = arith.constant 16 : index
    %c0_51 = arith.constant 0 : index
    %54 = vector.load %arg14[%c16, %c0_51] : memref<72x64xbf16, #tpu.memory_space<vmem>>, vector<8x64xbf16>
    %c24_52 = arith.constant 24 : index
    %c0_53 = arith.constant 0 : index
    %55 = vector.load %arg14[%c24_52, %c0_53] : memref<72x64xbf16, #tpu.memory_space<vmem>>, vector<8x64xbf16>
    %c32_54 = arith.constant 32 : index
    %c0_55 = arith.constant 0 : index
    %56 = vector.load %arg14[%c32_54, %c0_55] : memref<72x64xbf16, #tpu.memory_space<vmem>>, vector<8x64xbf16>
    %c40_56 = arith.constant 40 : index
    %c0_57 = arith.constant 0 : index
    %57 = vector.load %arg14[%c40_56, %c0_57] : memref<72x64xbf16, #tpu.memory_space<vmem>>, vector<8x64xbf16>
    %c48_58 = arith.constant 48 : index
    %c0_59 = arith.constant 0 : index
    %58 = vector.load %arg14[%c48_58, %c0_59] : memref<72x64xbf16, #tpu.memory_space<vmem>>, vector<8x64xbf16>
    %c56 = arith.constant 56 : index
    %c0_60 = arith.constant 0 : index
    %59 = vector.load %arg14[%c56, %c0_60] : memref<72x64xbf16, #tpu.memory_space<vmem>>, vector<8x64xbf16>
    %c64_61 = arith.constant 64 : index
    %c0_62 = arith.constant 0 : index
    %60 = vector.load %arg14[%c64_61, %c0_62] : memref<72x64xbf16, #tpu.memory_space<vmem>>, vector<8x64xbf16>
    %61 = tpu.concatenate %52, %53, %54, %55, %56, %57, %58, %59, %60 in 1 : vector<8x64xbf16>, vector<8x64xbf16>, vector<8x64xbf16>, vector<8x64xbf16>, vector<8x64xbf16>, vector<8x64xbf16>, vector<8x64xbf16>, vector<8x64xbf16>, vector<8x64xbf16> -> vector<8x576xbf16>
    %c0_63 = arith.constant 0 : index
    %c0_64 = arith.constant 0 : index
    %62 = vector.load %arg6[%c0_63, %c0_64] : memref<576x64xbf16, #tpu.memory_space<vmem>>, vector<576x64xbf16>
    %cst_65 = arith.constant dense<0.000000e+00> : vector<8x64xf32>
    %63 = tpu.matmul %61, %62, %cst_65 {dimension_numbers = #tpu.dot_dimension_numbers<[1], [0], [0], [1], [0, 0, 1, 1], [], []>} : vector<8x576xbf16>, vector<576x64xbf16>, vector<8x64xf32> -> vector<8x64xf32>
    %c0_66 = arith.constant 0 : index
    %c0_67 = arith.constant 0 : index
    %64 = vector.load %arg7[%c0_66, %c0_67] : memref<1x64xf32, #tpu.memory_space<vmem>>, vector<1x64xf32>
    %65 = vector.broadcast %64 : vector<1x64xf32> to vector<8x64xf32>
    %66 = arith.addf %63, %65 : vector<8x64xf32>
    %cst_68 = arith.constant 0.000000e+00 : f32
    %67 = vector.broadcast %cst_68 : f32 to vector<8x64xf32>
    %68 = arith.maximumf %66, %67 : vector<8x64xf32>
    %69 = arith.truncf %68 : vector<8x64xf32> to vector<8x64xbf16>
    %c0_69 = arith.constant 0 : index
    %c0_70 = arith.constant 0 : index
    %70 = vector.load %arg8[%c0_69, %c0_70] : memref<64x256xbf16, #tpu.memory_space<vmem>>, vector<64x256xbf16>
    %cst_71 = arith.constant dense<0.000000e+00> : vector<8x256xf32>
    %71 = tpu.matmul %69, %70, %cst_71 {dimension_numbers = #tpu.dot_dimension_numbers<[1], [0], [0], [1], [0, 0, 1, 1], [], []>} : vector<8x64xbf16>, vector<64x256xbf16>, vector<8x256xf32> -> vector<8x256xf32>
    %c0_72 = arith.constant 0 : index
    %c0_73 = arith.constant 0 : index
    %72 = vector.load %arg9[%c0_72, %c0_73] : memref<1x256xf32, #tpu.memory_space<vmem>>, vector<1x256xf32>
    %73 = vector.broadcast %72 : vector<1x256xf32> to vector<8x256xf32>
    %74 = arith.addf %71, %73 : vector<8x256xf32>
    %cst_74 = arith.constant 0.000000e+00 : f32
    %75 = vector.broadcast %cst_74 : f32 to vector<8x256xf32>
    %76 = arith.cmpf oge, %74, %75 : vector<8x256xf32>
    %cst_75 = arith.constant 0.00999999977 : f32
    %77 = vector.broadcast %cst_75 : f32 to vector<8x256xf32>
    %78 = arith.mulf %77, %74 : vector<8x256xf32>
    %79 = arith.select %76, %74, %78 : vector<8x256xi1>, vector<8x256xf32>
    %80 = arith.truncf %79 : vector<8x256xf32> to vector<8x256xbf16>
    %c0_76 = arith.constant 0 : index
    %c0_77 = arith.constant 0 : index
    %81 = vector.load %arg10[%c0_76, %c0_77] : memref<256x128xbf16, #tpu.memory_space<vmem>>, vector<256x128xbf16>
    %cst_78 = arith.constant dense<0.000000e+00> : vector<8x128xf32>
    %82 = tpu.matmul %80, %81, %cst_78 {dimension_numbers = #tpu.dot_dimension_numbers<[1], [0], [0], [1], [0, 0, 1, 1], [], []>} : vector<8x256xbf16>, vector<256x128xbf16>, vector<8x128xf32> -> vector<8x128xf32>
    %c0_79 = arith.constant 0 : index
    %c0_80 = arith.constant 0 : index
    %83 = vector.load %arg11[%c0_79, %c0_80] : memref<1x128xf32, #tpu.memory_space<vmem>>, vector<1x128xf32>
    %84 = vector.broadcast %83 : vector<1x128xf32> to vector<8x128xf32>
    %85 = arith.addf %82, %84 : vector<8x128xf32>
    %86 = tpu.iota {dimensions = array<i32: 1>} : vector<8x128xi32>
    %c4_i32 = arith.constant 4 : i32
    %87 = vector.broadcast %c4_i32 : i32 to vector<8x128xi32>
    %88 = arith.cmpi slt, %86, %87 : vector<8x128xi32>
    %cst_81 = arith.constant 0.000000e+00 : f32
    %89 = vector.broadcast %cst_81 : f32 to vector<8x128xf32>
    %90 = arith.select %88, %85, %89 : vector<8x128xi1>, vector<8x128xf32>
    %cst_82 = arith.constant dense<0.000000e+00> : vector<8xf32>
    %91 = vector.multi_reduction <add>, %90, %cst_82 [1] : vector<8x128xf32> to vector<8xf32>
    %92 = vector.shape_cast %91 : vector<8xf32> to vector<8x1xf32>
    %cst_83 = arith.constant 2.500000e-01 : f32
    %93 = vector.broadcast %cst_83 : f32 to vector<8x1xf32>
    %94 = arith.mulf %92, %93 : vector<8x1xf32>
    %c4_i32_84 = arith.constant 4 : i32
    %95 = vector.broadcast %c4_i32_84 : i32 to vector<8x128xi32>
    %96 = arith.cmpi eq, %86, %95 : vector<8x128xi32>
    %cst_85 = arith.constant 0.000000e+00 : f32
    %97 = vector.broadcast %cst_85 : f32 to vector<8x128xf32>
    %98 = arith.select %96, %85, %97 : vector<8x128xi1>, vector<8x128xf32>
    %cst_86 = arith.constant dense<0.000000e+00> : vector<8xf32>
    %99 = vector.multi_reduction <add>, %98, %cst_86 [1] : vector<8x128xf32> to vector<8xf32>
    %100 = vector.shape_cast %99 : vector<8xf32> to vector<8x1xf32>
    %101 = vector.broadcast %94 : vector<8x1xf32> to vector<8x128xf32>
    %102 = arith.subf %85, %101 : vector<8x128xf32>
    %103 = vector.broadcast %100 : vector<8x1xf32> to vector<8x128xf32>
    %104 = arith.addf %103, %102 : vector<8x128xf32>
    %cst_87 = arith.constant 0.000000e+00 : f32
    %105 = vector.broadcast %cst_87 : f32 to vector<8x128xf32>
    %106 = arith.select %88, %104, %105 : vector<8x128xi1>, vector<8x128xf32>
    %c0_88 = arith.constant 0 : index
    %c0_89 = arith.constant 0 : index
    %107 = vector.load %arg12[%c0_88, %c0_89] : memref<8x128xf32, #tpu.memory_space<vmem>>, vector<8x128xf32>
    tpu.vector_store %arg12[%c0_88, %c0_89], %106 {strides = array<i32>} : memref<8x128xf32, #tpu.memory_space<vmem>>, vector<8x128xf32>,
    return
  }
  func.func @transform_0(%arg0: i32) -> (i32, i32) {
    %c0_i32 = arith.constant 0 : i32
    %c0_i32_0 = arith.constant 0 : i32
    return %arg0, %c0_i32 : i32, i32
  }
  func.func @transform_1(%arg0: i32) -> (i32, i32) {
    %c0_i32 = arith.constant 0 : i32
    %c0_i32_0 = arith.constant 0 : i32
    %c0_i32_1 = arith.constant 0 : i32
    return %c0_i32, %c0_i32_0 : i32, i32
  }
  func.func @transform_2(%arg0: i32) -> (i32, i32) {
    %c0_i32 = arith.constant 0 : i32
    %c0_i32_0 = arith.constant 0 : i32
    %c0_i32_1 = arith.constant 0 : i32
    return %c0_i32, %c0_i32_0 : i32, i32
  }
  func.func @transform_3(%arg0: i32) -> (i32, i32) {
    %c0_i32 = arith.constant 0 : i32
    %c0_i32_0 = arith.constant 0 : i32
    %c0_i32_1 = arith.constant 0 : i32
    return %c0_i32, %c0_i32_0 : i32, i32
  }
  func.func @transform_4(%arg0: i32) -> (i32, i32) {
    %c0_i32 = arith.constant 0 : i32
    %c0_i32_0 = arith.constant 0 : i32
    %c0_i32_1 = arith.constant 0 : i32
    return %c0_i32, %c0_i32_0 : i32, i32
  }
  func.func @transform_5(%arg0: i32) -> (i32, i32) {
    %c0_i32 = arith.constant 0 : i32
    %c0_i32_0 = arith.constant 0 : i32
    %c0_i32_1 = arith.constant 0 : i32
    return %c0_i32, %c0_i32_0 : i32, i32
  }
  func.func @transform_6(%arg0: i32) -> (i32, i32) {
    %c0_i32 = arith.constant 0 : i32
    %c0_i32_0 = arith.constant 0 : i32
    %c0_i32_1 = arith.constant 0 : i32
    return %c0_i32, %c0_i32_0 : i32, i32
  }
  func.func @transform_7(%arg0: i32) -> (i32, i32) {
    %c0_i32 = arith.constant 0 : i32
    %c0_i32_0 = arith.constant 0 : i32
    %c0_i32_1 = arith.constant 0 : i32
    return %c0_i32, %c0_i32_0 : i32, i32
  }
  func.func @transform_8(%arg0: i32) -> (i32, i32) {
    %c0_i32 = arith.constant 0 : i32
    %c0_i32_0 = arith.constant 0 : i32
    %c0_i32_1 = arith.constant 0 : i32
    return %c0_i32, %c0_i32_0 : i32, i32
  }
  func.func @transform_9(%arg0: i32) -> (i32, i32) {
    %c0_i32 = arith.constant 0 : i32
    %c0_i32_0 = arith.constant 0 : i32
    %c0_i32_1 = arith.constant 0 : i32
    return %c0_i32, %c0_i32_0 : i32, i32
  }
  func.func @transform_10(%arg0: i32) -> (i32, i32) {
    %c0_i32 = arith.constant 0 : i32
    %c0_i32_0 = arith.constant 0 : i32
    %c0_i32_1 = arith.constant 0 : i32
    return %c0_i32, %c0_i32_0 : i32, i32
  }
  func.func @transform_11(%arg0: i32) -> (i32, i32) {
    %c0_i32 = arith.constant 0 : i32
    %c0_i32_0 = arith.constant 0 : i32
    return %arg0, %c0_i32 : i32, i32
  }
}

</mosaic_0001>

<bundles_post_ra>
// kernel: forward_batch.1
= control target key start
LH: loop header
LB: loop body
LE: loop exit
PB: predicated region body
PF: predicated region fallthrough
CT: control target
= control target key end

     0   :  { %s4500_s17 = smov 0   ;;  %s5384_s0 = inlined_call_operand.vmem [shape: bf16[256,576], index: 0, kind: input, shape index: {}]   ;;  %s5385_s1 = inlined_call_operand.vmem [shape: bf16[576,128], index: 1, kind: input, shape index: {}]   ;;  %s5386_s2 = inlined_call_operand.vmem [shape: f32[1,128], index: 2, kind: input, shape index: {}]   ;;  %s5387_s3 = inlined_call_operand.vmem [shape: bf16[512,64], index: 3, kind: input, shape index: {}]   ;;  %s5388_s4 = inlined_call_operand.vmem [shape: f32[1,64], index: 4, kind: input, shape index: {}]   ;;  %s5389_s5 = inlined_call_operand.vmem [shape: bf16[576,64], index: 5, kind: input, shape index: {}]   ;;  %s5390_s6 = inlined_call_operand.vmem [shape: f32[1,64], index: 6, kind: input, shape index: {}]   ;;  %s5391_s7 = inlined_call_operand.vmem [shape: bf16[64,256], index: 7, kind: input, shape index: {}]   ;;  %s5392_s8 = inlined_call_operand.vmem [shape: f32[1,256], index: 8, kind: input, shape index: {}]   ;;  %s5393_s9 = inlined_call_operand.vmem [shape: bf16[256,128], index: 9, kind: input, shape index: {}]   ;;  %s5394_s10 = inlined_call_operand.vmem [shape: f32[1,128], index: 10, kind: input, shape index: {}]   ;;  %s5395_s11 = inlined_call_operand.vmem [shape: f32[16,128], index: 11, kind: output, shape index: {}]  }
   0x1 LB: > { %s4506_s18 = sadd.s32 4294967295, %s4437_s17   ;;  %p3127_p0 = scmp.ge.s32.totalorder %s4437_s17, 1  ;;  %s4437_s17 = sphi %s4500_s17, %s21_s17  }
   0x2   : > { %p339_p1 = scmp.lt.s32.totalorder %s4437_s17, 3 }
   0x4   : > { %p340_p2 = pnand %p3127_p0, %p339_p1 }
   0x5   : > { %s3128_s26 = sshll.u32 (!%p340_p2), %s4506_s18, 4  ;;  %p386_p4 = scmp.lt.s32.totalorder (!%p340_p2), %s4506_s18, 1 }
   0x6   : > { %343 = sbr.rel (%p340_p2) target bundleno = 1255 (0x4e7), region = 64  ;;  %p380_p3 = scmp.lt.s32.totalorder (!%p340_p2), %s3128_s26, 31 }
   0xb   : > { %v4127_v0 = vld [vmem:[%s5385_s1 + $0x38] sm:$0xff]  ;;  %v4126_v4 = vld [vmem:[%s5385_s1 + $0x30] sm:$0xff]  ;;  %v4125_v8 = vld [vmem:[%s5385_s1 + $0x28] sm:$0xff]  ;;  %s5397_s26 = smov (!%p380_p3, %s3128_s26), 31  ;;  %vm931_vm0 = vcmask 523264   ;;  %vm1627_vm1 = vcmask 519168  }
   0xc   : > { %v4143_v1 = vld [vmem:[%s5385_s1 + $0xb8] sm:$0xff]  ;;  %956 = vmatpush.bf16.msra.mxu0 %v4127_v0  ;;  %v4142_v5 = vld [vmem:[%s5385_s1 + $0xb0] sm:$0xff]  ;;  %v4141_v9 = vld [vmem:[%s5385_s1 + $0xa8] sm:$0xff]  ;;  %s4415_s12 = smul.u32 20, %s5397_s26  ;;  %s4439_s26 = smov 64  }
   0xd   : > { %v4135_v2 = vld [vmem:[%s5385_s1 + $0x78] sm:$0xff]  ;;  %1054 = vmatpush.bf16.msra.mxu2 %v4143_v1  ;;  %v4134_v6 = vld [vmem:[%s5385_s1 + $0x70] sm:$0xff]  ;;  %v4133_v10 = vld [vmem:[%s5385_s1 + $0x68] sm:$0xff]  ;;  %s5399_s18 = smov (!%p386_p4, %s4506_s18), 1 }
   0xe   : > { %v4151_v3 = vld [vmem:[%s5385_s1 + $0xf8] sm:$0xff]  ;;  %1005 = vmatpush.bf16.msra.mxu1 %v4135_v2  ;;  %v4150_v7 = vld [vmem:[%s5385_s1 + $0xf0] sm:$0xff]  ;;  %v4149_v11 = vld [vmem:[%s5385_s1 + $0xe8] sm:$0xff]  ;;  %s4592_s24 = scalar_lea.vmem %s5384_s0, %s4415_s12  ;;  %s3130_s19 = sshll.u32 %s5399_s18, 3 }
   0xf   : > { %1103 = vmatpush.bf16.msra.mxu3 %v4151_v3  ;;  %v4124_v12 = vld [vmem:[%s5385_s1 + $0x20] sm:$0xff]  ;;  %v4123_v16 = vld [vmem:[%s5385_s1 + $0x18] sm:$0xff]  ;;  %v4122_v20 = vld [vmem:[%s5385_s1 + $0x10] sm:$0xff]  ;;  %s389_s21 = scalar_lea.vmem %s5395_s11, %s3130_s19 }
  0x10   : > { %957 = vmatpush.bf16.msra.mxu0 %v4126_v4  ;;  %v4140_v13 = vld [vmem:[%s5385_s1 + $0xa0] sm:$0xff]  ;;  %v4139_v17 = vld [vmem:[%s5385_s1 + $0x98] sm:$0xff]  ;;  %v4138_v21 = vld [vmem:[%s5385_s1 + $0x90] sm:$0xff] }
  0x11   : > { %1055 = vmatpush.bf16.msra.mxu2 %v4142_v5  ;;  %v4132_v14 = vld [vmem:[%s5385_s1 + $0x60] sm:$0xff]  ;;  %v4131_v18 = vld [vmem:[%s5385_s1 + $0x58] sm:$0xff]  ;;  %v4130_v22 = vld [vmem:[%s5385_s1 + $0x50] sm:$0xff] }
  0x12   : > { %1006 = vmatpush.bf16.msra.mxu1 %v4134_v6  ;;  %v4148_v15 = vld [vmem:[%s5385_s1 + $0xe0] sm:$0xff]  ;;  %v4147_v19 = vld [vmem:[%s5385_s1 + $0xd8] sm:$0xff]  ;;  %v4146_v23 = vld [vmem:[%s5385_s1 + $0xd0] sm:$0xff] }
  0x13   : > { %1104 = vmatpush.bf16.msra.mxu3 %v4150_v7  ;;  %v4121_v24 = vld [vmem:[%s5385_s1 + $0x8] sm:$0xff]  ;;  %v4120_v28 = vld [vmem:[%s5385_s1] sm:$0xff]  ;;  %v4082_v33 = vld [vmem:[%s4592_s24 + $0x10] sm:$0xf0] }
  0x14   : > { %958 = vmatpush.bf16.msra.mxu0 %v4125_v8  ;;  %v4137_v25 = vld [vmem:[%s5385_s1 + $0x88] sm:$0xff]  ;;  %v4136_v29 = vld [vmem:[%s5385_s1 + $0x80] sm:$0xff]  ;;  %v4083_v35 = vld [vmem:[%s4592_s24 + $0x18] sm:$0xf0] }
  0x15   : > { %1056 = vmatpush.bf16.msra.mxu2 %v4141_v9  ;;  %v4129_v26 = vld [vmem:[%s5385_s1 + $0x48] sm:$0xff]  ;;  %v4128_v30 = vld [vmem:[%s5385_s1 + $0x40] sm:$0xff]  ;;  %v3135_v37 = vld [vmem:[%s4592_s24 + $0x14] sm:$0xf0] }
  0x16   : > { %1007 = vmatpush.bf16.msra.mxu1 %v4133_v10  ;;  %v4145_v27 = vld [vmem:[%s5385_s1 + $0xc8] sm:$0xff]  ;;  %v4144_v31 = vld [vmem:[%s5385_s1 + $0xc0] sm:$0xff]  ;;  %v4155_v40 = vld [vmem:[%s5385_s1 + $0x118] sm:$0xff] }
  0x17   : > { %1105 = vmatpush.bf16.msra.mxu3 %v4149_v11  ;;  %v3133_v32 = vld [vmem:[%s4592_s24] sm:$0xf]  ;;  %v3141_v34 = vld [vmem:[%s4592_s24 + $0x8] sm:$0xf]  ;;  %v4080_v36 = vld [vmem:[%s4592_s24 + $0x4] sm:$0xf] }
  0x18   : > { %959 = vmatpush.bf16.msra.mxu0 %v4124_v12  ;;  %v4081_v38 = vld [vmem:[%s4592_s24 + $0xc] sm:$0xf]  ;;  %v3143_v39 = vld [vmem:[%s4592_s24 + $0x1c] sm:$0xf0]  ;;  %v3134_v41 = vor.u32 %v4082_v33, %v3133_v32  ;;  %v3142_v42 = vor.u32 %v4083_v35, %v3141_v34  ;;  %v3138_v43 = vor.u32 %v4080_v36, %v3135_v37  ;;  %v4154_v45 = vld [vmem:[%s5385_s1 + $0x110] sm:$0xff] }
  0x19   : > { %1057 = vmatpush.bf16.msra.mxu2 %v4140_v13  ;;  %v3146_v44 = vor.u32 %v4081_v38, %v3143_v39  ;;  %v3153_v46 = vld [vmem:[%s4592_s24 + $0x28] sm:$0xf]  ;;  %v4087_v47 = vld [vmem:[%s4592_s24 + $0x38] sm:$0xf0]  ;;  %v3161_v48 = vld [vmem:[%s4592_s24 + $0x30] sm:$0xf] }
  0x1a   : > { %1008 = vmatpush.bf16.msra.mxu1 %v4132_v14  ;;  %v4088_v49 = vld [vmem:[%s4592_s24 + $0x40] sm:$0xf0]  ;;  %v4085_v50 = vld [vmem:[%s4592_s24 + $0x2c] sm:$0xf]  ;;  %v3155_v51 = vld [vmem:[%s4592_s24 + $0x3c] sm:$0xf0]  ;;  %v3154_v54 = vor.u32 %v4087_v47, %v3153_v46 }
  0x1b   : > { %1106 = vmatpush.bf16.msra.mxu3 %v4148_v15  ;;  %v4086_v52 = vld [vmem:[%s4592_s24 + $0x34] sm:$0xf]  ;;  %v3163_v53 = vld [vmem:[%s4592_s24 + $0x44] sm:$0xf0]  ;;  %v3162_v55 = vor.u32 %v4088_v49, %v3161_v48  ;;  %v3158_v56 = vor.u32 %v4085_v50, %v3155_v51  ;;  %v3173_v58 = vld [vmem:[%s4592_s24 + $0x50] sm:$0xf] }
  0x1c   : > { %960 = vmatpush.bf16.msra.mxu0 %v4123_v16  ;;  %v3166_v57 = vor.u32 %v4086_v52, %v3163_v53  ;;  %v4092_v59 = vld [vmem:[%s4592_s24 + $0x60] sm:$0xf0]  ;;  %v3181_v60 = vld [vmem:[%s4592_s24 + $0x58] sm:$0xf]  ;;  %v4093_v61 = vld [vmem:[%s4592_s24 + $0x68] sm:$0xf0] }
  0x1d   : > { %1058 = vmatpush.bf16.msra.mxu2 %v4139_v17  ;;  %v4090_v62 = vld [vmem:[%s4592_s24 + $0x54] sm:$0xf]  ;;  %v3175_v63 = vld [vmem:[%s4592_s24 + $0x64] sm:$0xf0]  ;;  %v4091_v0 = vld [vmem:[%s4592_s24 + $0x5c] sm:$0xf]  ;;  %v3174_v2 = vor.u32 %v4092_v59, %v3173_v58  ;;  %v3182_v3 = vor.u32 %v4093_v61, %v3181_v60 }
  0x1e   : > { %1009 = vmatpush.bf16.msra.mxu1 %v4131_v18  ;;  %v3183_v1 = vld [vmem:[%s4592_s24 + $0x6c] sm:$0xf0]  ;;  %v3178_v4 = vor.u32 %v4090_v62, %v3175_v63  ;;  %v4153_v6 = vld [vmem:[%s5385_s1 + $0x108] sm:$0xff]  ;;  %v3193_v7 = vld [vmem:[%s4592_s24 + $0x78] sm:$0xf] }
  0x1f   : > { %1107 = vmatpush.bf16.msra.mxu3 %v4147_v19  ;;  %v3186_v5 = vor.u32 %v4091_v0, %v3183_v1  ;;  %v4097_v8 = vld [vmem:[%s4592_s24 + $0x88] sm:$0xf0]  ;;  %v3201_v9 = vld [vmem:[%s4592_s24 + $0x80] sm:$0xf]  ;;  %v4098_v10 = vld [vmem:[%s4592_s24 + $0x90] sm:$0xf0] }
  0x20   : > { %961 = vmatpush.bf16.msra.mxu0 %v4122_v20  ;;  %v4095_v11 = vld [vmem:[%s4592_s24 + $0x7c] sm:$0xf]  ;;  %v3195_v12 = vld [vmem:[%s4592_s24 + $0x8c] sm:$0xf0]  ;;  %v4096_v13 = vld [vmem:[%s4592_s24 + $0x84] sm:$0xf]  ;;  %v3194_v15 = vor.u32 %v4097_v8, %v3193_v7  ;;  %v3202_v16 = vor.u32 %v4098_v10, %v3201_v9 }
  0x21   : > { %1059 = vmatpush.bf16.msra.mxu2 %v4138_v21  ;;  %v3203_v14 = vld [vmem:[%s4592_s24 + $0x94] sm:$0xf0]  ;;  %v3198_v17 = vor.u32 %v4095_v11, %v3195_v12  ;;  %v3213_v19 = vld [vmem:[%s4592_s24 + $0xa0] sm:$0xf]  ;;  %v4102_v20 = vld [vmem:[%s4592_s24 + $0xb0] sm:$0xf0] }
  0x22   : > { %1010 = vmatpush.bf16.msra.mxu1 %v4130_v22  ;;  %v3206_v18 = vor.u32 %v4096_v13, %v3203_v14  ;;  %v3221_v21 = vld [vmem:[%s4592_s24 + $0xa8] sm:$0xf]  ;;  %v4103_v22 = vld [vmem:[%s4592_s24 + $0xb8] sm:$0xf0]  ;;  %v3241_v34 = vld [vmem:[%s4592_s24 + $0xd0] sm:$0xf] }
  0x23   : > { %1108 = vmatpush.bf16.msra.mxu3 %v4146_v23  ;;  %v4100_v23 = vld [vmem:[%s4592_s24 + $0xa4] sm:$0xf]  ;;  %v3233_v32 = vld [vmem:[%s4592_s24 + $0xc8] sm:$0xf]  ;;  %v4107_v33 = vld [vmem:[%s4592_s24 + $0xd8] sm:$0xf0] }
  0x24   : > { %962 = vmatpush.bf16.msra.mxu0 %v4121_v24  ;;  %v3215_v24 = vld [vmem:[%s4592_s24 + $0xb4] sm:$0xf0]  ;;  %v4108_v35 = vld [vmem:[%s4592_s24 + $0xe0] sm:$0xf0]  ;;  %v4105_v36 = vld [vmem:[%s4592_s24 + $0xcc] sm:$0xf] }
  0x25   : > { %1060 = vmatpush.bf16.msra.mxu2 %v4137_v25  ;;  %v4101_v25 = vld [vmem:[%s4592_s24 + $0xac] sm:$0xf]  ;;  %v3235_v37 = vld [vmem:[%s4592_s24 + $0xdc] sm:$0xf0]  ;;  %v4106_v38 = vld [vmem:[%s4592_s24 + $0xd4] sm:$0xf] }
  0x26   : > { %1011 = vmatpush.bf16.msra.mxu1 %v4129_v26  ;;  %v3223_v26 = vld [vmem:[%s4592_s24 + $0xbc] sm:$0xf0]  ;;  %v3243_v39 = vld [vmem:[%s4592_s24 + $0xe4] sm:$0xf0]  ;;  %v3261_v46 = vld [vmem:[%s4592_s24 + $0xf8] sm:$0xf] }
  0x27   : > { %1109 = vmatpush.bf16.msra.mxu3 %v4145_v27  ;;  %v3214_v27 = vor.u32 %v4102_v20, %v3213_v19  ;;  %v4113_v47 = vld [vmem:[%s4592_s24 + $0x108] sm:$0xf0]  ;;  %v4110_v48 = vld [vmem:[%s4592_s24 + $0xf4] sm:$0xf]  ;;  %v3255_v49 = vld [vmem:[%s4592_s24 + $0x104] sm:$0xf0] }
  0x28   : > { %963 = vmatpush.bf16.msra.mxu0 %v4120_v28  ;;  %v3222_v28 = vor.u32 %v4103_v22, %v3221_v21  ;;  %v4111_v50 = vld [vmem:[%s4592_s24 + $0xfc] sm:$0xf]  ;;  %v3263_v51 = vld [vmem:[%s4592_s24 + $0x10c] sm:$0xf0]  ;;  %v3262_v53 = vor.u32 %v4113_v47, %v3261_v46  ;;  %v3281_v58 = vld [vmem:[%s4592_s24 + $0x120] sm:$0xf] }
  0x29   : > { %1061 = vmatpush.bf16.msra.mxu2 %v4136_v29  ;;  %v3218_v29 = vor.u32 %v4100_v23, %v3215_v24  ;;  %v4118_v59 = vld [vmem:[%s4592_s24 + $0x130] sm:$0xf0]  ;;  %v4115_v60 = vld [vmem:[%s4592_s24 + $0x11c] sm:$0xf]  ;;  %v3275_v61 = vld [vmem:[%s4592_s24 + $0x12c] sm:$0xf0] }
  0x2a   : > { %1012 = vmatpush.bf16.msra.mxu1 %v4128_v30  ;;  %v3226_v30 = vor.u32 %v4101_v25, %v3223_v26  ;;  %v4116_v62 = vld [vmem:[%s4592_s24 + $0x124] sm:$0xf]  ;;  %v3283_v63 = vld [vmem:[%s4592_s24 + $0x134] sm:$0xf0]  ;;  %v3282_v1 = vor.u32 %v4118_v59, %v3281_v58  ;;  %v4089_v10 = vld [vmem:[%s4592_s24 + $0x48] sm:$0xf0] }
  0x2b   : > { %1110 = vmatpush.bf16.msra.mxu3 %v4144_v31  ;;  %964 = vmatmul.bf16.vlgmr.msra.gmra.mxu0 %v3134_v41  ;;  %v4152_v31 = vld [vmem:[%s5385_s1 + $0x100] sm:$0xff]  ;;  %v3242_v41 = vor.u32 %v4108_v35, %v3241_v34  ;;  %v3169_v9 = vld [vmem:[%s4592_s24 + $0x38] sm:$0xf]  ;;  %v4170_v22 = vld [vmem:[%s5387_s3 + $0x70] sm:$0xff] }
  0x2c   : > { %1156 = vmatpush.bf16.msrb.mxu0 %v4155_v40  ;;  %1062 = vmatmul.bf16.vlgmr.msra.gmra.mxu2 %v3142_v42  ;;  %v3234_v40 = vor.u32 %v4107_v33, %v3233_v32  ;;  %v3238_v42 = vor.u32 %v4105_v36, %v3235_v37  ;;  %v3170_v11 = vor.u32 %v4089_v10, %v3169_v9  ;;  %v4171_v14 = vld [vmem:[%s5387_s3 + $0x78] sm:$0xff]  ;;  %v4178_v23 = vld [vmem:[%s5387_s3 + $0xb0] sm:$0xff]  ;;  %v3209_v25 = vld [vmem:[%s4592_s24 + $0x88] sm:$0xf] }
  0x2d   : > { %1013 = vmatmul.bf16.vlgmr.msra.gmra.mxu1 %v3138_v43  ;;  %v3246_v43 = vor.u32 %v4106_v38, %v3243_v39  ;;  %1567 = vmatpush.bf16.msrb.mxu2 %v4171_v14  ;;  %v4162_v24 = vld [vmem:[%s5387_s3 + $0x30] sm:$0xff]  ;;  %v4099_v26 = vld [vmem:[%s4592_s24 + $0x98] sm:$0xf0]  ;;  %v4161_v32 = vld [vmem:[%s5387_s3 + $0x28] sm:$0xff] }
  0x2e   : > { %1111 = vmatmul.bf16.vlgmr.msra.gmra.mxu3 %v3146_v44  ;;  %v3253_v44 = vld [vmem:[%s4592_s24 + $0xf0] sm:$0xf]  ;;  %v4104_v34 = vld [vmem:[%s4592_s24 + $0xc0] sm:$0xf0]  ;;  %v4167_v47 = vld [vmem:[%s5387_s3 + $0x58] sm:$0xff] }
  0x2f   : > { %v3229_v33 = vld [vmem:[%s4592_s24 + $0xb0] sm:$0xf]  ;;  %v4168_v38 = vld [vmem:[%s5387_s3 + $0x60] sm:$0xff]  ;;  %v4157_v59 = vld [vmem:[%s5387_s3 + $0x8] sm:$0xff] }
  0x30   : > { %1157 = vmatpush.bf16.msrb.mxu0 %v4154_v45  ;;  %v4112_v45 = vld [vmem:[%s4592_s24 + $0x100] sm:$0xf0]  ;;  %v3230_v35 = vor.u32 %v4104_v34, %v3229_v33 }
  0x31   : > { %v3254_v52 = vor.u32 %v4112_v45, %v3253_v44  ;;  %1568 = vmatpush.bf16.msrb.mxu2 %v4170_v22  ;;  %v4176_v39 = vld [vmem:[%s5387_s3 + $0xa0] sm:$0xff] }
  0x32   : > { %v4164_v22 = vld [vmem:[%s5387_s3 + $0x40] sm:$0xff] }
  0x34   : > { %1158 = vmatpush.bf16.msrb.mxu0 %v4153_v6 }
  0x38   : > { %1159 = vmatpush.bf16.msrb.mxu0 %v4152_v31  ;;  %v4177_v31 = vld [vmem:[%s5387_s3 + $0xa8] sm:$0xff] }
  0x3b   : > { %969 = vmatmul.bf16.gmra.mxu0 %v3154_v54  ;;  %v3258_v54 = vor.u32 %v4110_v48, %v3255_v49  ;;  %v4175_v49 = vld [vmem:[%s5387_s3 + $0x98] sm:$0xff] }
  0x3c   : > { %1067 = vmatmul.bf16.gmra.mxu2 %v3162_v55  ;;  %v3266_v55 = vor.u32 %v4111_v50, %v3263_v51  ;;  %v4159_v50 = vld [vmem:[%s5387_s3 + $0x18] sm:$0xff]  ;;  %v3269_v51 = vld [vmem:[%s4592_s24 + $0x100] sm:$0xf] }
  0x3d   : > { %1018 = vmatmul.bf16.gmra.mxu1 %v3158_v56  ;;  %v3273_v56 = vld [vmem:[%s4592_s24 + $0x118] sm:$0xf] }
  0x3e   : > { %1116 = vmatmul.bf16.gmra.mxu3 %v3166_v57  ;;  %v4117_v57 = vld [vmem:[%s4592_s24 + $0x128] sm:$0xf0] }
  0x3f   : > { %v3274_v0 = vor.u32 %v4117_v57, %v3273_v56  ;;  %v4158_v57 = vld [vmem:[%s5387_s3 + $0x10] sm:$0xff] }
  0x4b   : > { %974 = vmatmul.bf16.gmra.mxu0 %v3174_v2  ;;  %v3278_v2 = vor.u32 %v4115_v60, %v3275_v61 }
  0x4c   : > { %1072 = vmatmul.bf16.gmra.mxu2 %v3182_v3  ;;  %v3286_v3 = vor.u32 %v4116_v62, %v3283_v63  ;;  %v4156_v62 = vld [vmem:[%s5387_s3] sm:$0xff] }
  0x4d   : > { %1023 = vmatmul.bf16.gmra.mxu1 %v3178_v4  ;;  %v3149_v4 = vld [vmem:[%s4592_s24 + $0x10] sm:$0xf] }
  0x4e   : > { %1121 = vmatmul.bf16.gmra.mxu3 %v3186_v5  ;;  %v4084_v5 = vld [vmem:[%s4592_s24 + $0x20] sm:$0xf0] }
  0x4f   : > { %v3150_v6 = vor.u32 %v4084_v5, %v3149_v4  ;;  %v4166_v4 = vld [vmem:[%s5387_s3 + $0x50] sm:$0xff] }
  0x50   : > { %v4174_v5 = vld [vmem:[%s5387_s3 + $0x90] sm:$0xff] }
  0x5b   : > { %979 = vmatmul.bf16.gmra.mxu0 %v3194_v15  ;;  %v4179_v15 = vld [vmem:[%s5387_s3 + $0xb8] sm:$0xff] }
  0x5c   : > { %1077 = vmatmul.bf16.gmra.mxu2 %v3202_v16  ;;  %v4163_v16 = vld [vmem:[%s5387_s3 + $0x38] sm:$0xff]  ;;  %1585 = vmatpush.bf16.msrb.mxu3 %v4179_v15 }
  0x5d   : > { %1028 = vmatmul.bf16.gmra.mxu1 %v3198_v17  ;;  %v3189_v17 = vld [vmem:[%s4592_s24 + $0x60] sm:$0xf] }
  0x5e   : > { %1126 = vmatmul.bf16.gmra.mxu3 %v3206_v18  ;;  %v4094_v18 = vld [vmem:[%s4592_s24 + $0x70] sm:$0xf0]  ;;  %1549 = vmatpush.bf16.msrb.mxu1 %v4163_v16  ;;  %v4165_v16 = vld [vmem:[%s5387_s3 + $0x48] sm:$0xff] }
  0x5f   : > { %v3190_v19 = vor.u32 %v4094_v18, %v3189_v17 }
  0x60   : > { %1586 = vmatpush.bf16.msrb.mxu3 %v4178_v23 }
  0x62   : > { %1550 = vmatpush.bf16.msrb.mxu1 %v4162_v24  ;;  %v4173_v24 = vld [vmem:[%s5387_s3 + $0x88] sm:$0xff] }
  0x64   : > { %1587 = vmatpush.bf16.msrb.mxu3 %v4177_v31  ;;  %v4195_v31 = vld [vmem:[%s5387_s3 + $0x38] sm:$0xff] }
  0x66   : > { %1551 = vmatpush.bf16.msrb.mxu1 %v4161_v32 }
  0x68   : > { %1588 = vmatpush.bf16.msrb.mxu3 %v4176_v39 }
  0x6b   : > { %984 = vmatmul.bf16.gmra.mxu0 %v3214_v27  ;;  %v3210_v27 = vor.u32 %v4099_v26, %v3209_v25 }
  0x6c   : > { %1082 = vmatmul.bf16.gmra.mxu2 %v3222_v28  ;;  %1589 = vmatpush.bf16.msrb.mxu3 %v4175_v49 }
  0x6d   : > { %1033 = vmatmul.bf16.gmra.mxu1 %v3218_v29 }
  0x6e   : > { %1131 = vmatmul.bf16.gmra.mxu3 %v3226_v30  ;;  %v4169_v30 = vld [vmem:[%s5387_s3 + $0x68] sm:$0xff] }
  0x6f   : > { %1569 = vmatpush.bf16.msrb.mxu2 %v4169_v30 }
  0x70   : > { %1590 = vmatpush.bf16.msrb.mxu3 %v4174_v5  ;;  %v4202_v5 = vld [vmem:[%s5387_s3 + $0x70] sm:$0xff] }
  0x73   : > { %1570 = vmatpush.bf16.msrb.mxu2 %v4168_v38  ;;  %v4194_v38 = vld [vmem:[%s5387_s3 + $0x30] sm:$0xff] }
  0x74   : > { %1591 = vmatpush.bf16.msrb.mxu3 %v4173_v24  ;;  %v4181_v24 = vld [vmem:[%s5387_s3 + $0xc8] sm:$0xff] }
  0x77   : > { %1571 = vmatpush.bf16.msrb.mxu2 %v4167_v47  ;;  %v4185_v47 = vld [vmem:[%s5387_s3 + $0xe8] sm:$0xff] }
  0x7b   : > { %989 = vmatmul.bf16.gmra.mxu0 %v3234_v40  ;;  %v4160_v40 = vld [vmem:[%s5387_s3 + $0x20] sm:$0xff]  ;;  %1572 = vmatpush.bf16.msrb.mxu2 %v4166_v4 }
  0x7c   : > { %1087 = vmatmul.bf16.gmra.mxu2 %v3242_v41  ;;  %v3249_v41 = vld [vmem:[%s4592_s24 + $0xd8] sm:$0xf]  ;;  %1552 = vmatpush.bf16.msrb.mxu1 %v4160_v40 }
  0x7d   : > { %1038 = vmatmul.bf16.gmra.mxu1 %v3238_v42  ;;  %v4109_v42 = vld [vmem:[%s4592_s24 + $0xe8] sm:$0xf0] }
  0x7e   : > { %1136 = vmatmul.bf16.gmra.mxu3 %v3246_v43  ;;  %v3250_v43 = vor.u32 %v4109_v42, %v3249_v41 }
  0x7f   : > { %1573 = vmatpush.bf16.msrb.mxu2 %v4165_v16 }
  0x80   : > { %1553 = vmatpush.bf16.msrb.mxu1 %v4159_v50 }
  0x83   : > { %1574 = vmatpush.bf16.msrb.mxu2 %v4164_v22 }
  0x84   : > { %1554 = vmatpush.bf16.msrb.mxu1 %v4158_v57  ;;  %v4192_v57 = vld [vmem:[%s5387_s3 + $0x20] sm:$0xff] }
  0x87   : > { %1931 = vmatpush.bf16.msra.mxu2 %v4195_v31 }
  0x88   : > { %1555 = vmatpush.bf16.msrb.mxu1 %v4157_v59 }
  0x8b   : > { %994 = vmatmul.bf16.gmra.mxu0 %v3254_v52  ;;  %v4114_v52 = vld [vmem:[%s4592_s24 + $0x110] sm:$0xf0]  ;;  %1932 = vmatpush.bf16.msra.mxu2 %v4194_v38 }
  0x8c   : > { %1092 = vmatmul.bf16.gmra.mxu2 %v3262_v53  ;;  %1556 = vmatpush.bf16.msrb.mxu1 %v4156_v62 }
  0x8d   : > { %1043 = vmatmul.bf16.gmra.mxu1 %v3258_v54  ;;  %v3270_v54 = vor.u32 %v4114_v52, %v3269_v51 }
  0x8e   : > { %1141 = vmatmul.bf16.gmra.mxu3 %v3266_v55 }
  0x9b   : > { %999 = vmatmul.bf16.gmra.mxu0 %v3274_v0  ;;  %v3289_v0 = vld [vmem:[%s4592_s24 + $0x128] sm:$0xf] }
  0x9c   : > { %1097 = vmatmul.bf16.gmra.mxu2 %v3282_v1  ;;  %v4119_v1 = vld [vmem:[%s4592_s24 + $0x138] sm:$0xf0] }
  0x9d   : > { %1048 = vmatmul.bf16.gmra.mxu1 %v3278_v2 }
  0x9e   : > { %1146 = vmatmul.bf16.gmra.mxu3 %v3286_v3  ;;  %v3290_v3 = vor.u32 %v4119_v1, %v3289_v0  ;;  %v4183_v0 = vld [vmem:[%s5387_s3 + $0xd8] sm:$0xff] }
  0xa8   : > { %v4690_v7 = vpop.f32.mrf.mxu0 }
  0xaa   : > { %v1014_v45 = vpop.f32.mrf.mxu1 }
  0xab   : > { %3435 = vmatmul.msk.bf16.vlgmr.msrb.gmra.mxu0 %vm931_vm0, %v3150_v6 }
  0xaf   : > { %v1063_v48 = vpop.f32.mrf.mxu2 }
  0xb0   : > { %v4693_v8 = vpop.f32.mrf.mxu0 }
  0xb1   : > { %v1112_v53 = vpop.f32.mrf.mxu3 }
  0xb2   : > { %v1016_v56 = vpop.f32.mrf.mxu1 }
  0xb7   : > { %v1065_v58 = vpop.f32.mrf.mxu2 }
  0xb8   : > { %v4697_v12 = vpop.f32.mrf.mxu0 }
  0xb9   : > { %v1114_v60 = vpop.f32.mrf.mxu3 }
  0xba   : > { %v1019_v63 = vpop.f32.mrf.mxu1 }
  0xbb   : > { %3436 = vmatmul.msk.bf16.gmra.mxu0 %vm931_vm0, %v3170_v11  ;;  %v4809_v11 = vld [vmem:[%s5386_s2] ss:$0 sm:$0xff] }
  0xbc   : > { %v966_v17 = vadd.f32 %v4809_v11, %v4690_v7  ;;  %v971_v49 = vadd.f32 %v4809_v11, %v4697_v12 }
  0xbe   : > { %v1015_v23 = vadd.f32 %v1014_v45, %v966_v17  ;;  %v4172_v45 = vld [vmem:[%s5387_s3 + $0x80] sm:$0xff]  ;;  %v1020_v12 = vadd.f32 %v1019_v63, %v971_v49  ;;  %v4191_v63 = vld [vmem:[%s5387_s3 + $0x18] sm:$0xff] }
  0xbf   : > { %v4793_v2 = vpop.f32.mrf.mxu2  ;;  %1592 = vmatpush.bf16.msrb.mxu3 %v4172_v45 }
  0xc0   : > { %v4700_v13 = vpop.f32.mrf.mxu0  ;;  %v1064_v7 = vadd.f32 %v1063_v48, %v1015_v23  ;;  %v4193_v48 = vld [vmem:[%s5387_s3 + $0x28] sm:$0xff] }
  0xc1   : > { %v4803_v9 = vpop.f32.mrf.mxu3  ;;  %1933 = vmatpush.bf16.msra.mxu2 %v4193_v48  ;;  %v4201_v23 = vld [vmem:[%s5387_s3 + $0x68] sm:$0xff] }
  0xc2   : > { %v1021_v10 = vpop.f32.mrf.mxu1  ;;  %v1113_v33 = vadd.f32 %v1112_v53, %v1064_v7  ;;  %v973_v53 = vadd.f32 %v4809_v11, %v4700_v13  ;;  %v4203_v13 = vld [vmem:[%s5387_s3 + $0x78] sm:$0xff] }
  0xc3   : > { %1949 = vmatpush.bf16.msra.mxu3 %v4203_v13 }
  0xc4   : > { %v1022_v62 = vadd.f32 %v1021_v10, %v973_v53  ;;  %v4182_v10 = vld [vmem:[%s5387_s3 + $0xd0] sm:$0xff] }
  0xc5   : > { %1934 = vmatpush.bf16.msra.mxu2 %v4192_v57  ;;  %v4218_v57 = vld [vmem:[%s5387_s3 + $0xf0] sm:$0xff] }
  0xc7   : > { %v1070_v14 = vpop.f32.mrf.mxu2  ;;  %1950 = vmatpush.bf16.msra.mxu3 %v4202_v5 }
  0xc8   : > { %v4713_v20 = vpop.f32.mrf.mxu0  ;;  %v1071_v1 = vadd.f32 %v1070_v14, %v1022_v62  ;;  %v4190_v14 = vld [vmem:[%s5387_s3 + $0x10] sm:$0xff] }
  0xc9   : > { %v4818_v18 = vpop.f32.mrf.mxu3  ;;  %1935 = vmatpush.bf16.msra.mxu2 %v4191_v63  ;;  %v4209_v63 = vld [vmem:[%s5387_s3 + $0xa8] sm:$0xff] }
  0xca   : > { %v4828_v25 = vpop.f32.mrf.mxu1  ;;  %v1120_v16 = vadd.f32 %v4818_v18, %v1071_v1  ;;  %v4189_v18 = vld [vmem:[%s5387_s3 + $0x8] sm:$0xff] }
  0xcb   : > { %3437 = vmatmul.msk.bf16.gmra.mxu0 %vm931_vm0, %v3190_v19  ;;  %v968_v19 = vadd.f32 %v4809_v11, %v4693_v8  ;;  %v4187_v8 = vld [vmem:[%s5387_s3 + $0xf8] sm:$0xff]  ;;  %1951 = vmatpush.bf16.msra.mxu3 %v4201_v23  ;;  %v4217_v1 = vld [vmem:[%s5387_s3 + $0xe8] sm:$0xff] }
  0xcc   : > { %1603 = vmatpush.bf16.msra.mxu1 %v4187_v8 }
  0xcd   : > { %1936 = vmatpush.bf16.msra.mxu2 %v4190_v14 }
  0xcf   : > { %v4830_v30 = vpop.f32.mrf.mxu2 }
  0xd0   : > { %v4716_v21 = vpop.f32.mrf.mxu0 }
  0xd1   : > { %v4838_v34 = vpop.f32.mrf.mxu3  ;;  %v978_v8 = vadd.f32 %v4809_v11, %v4716_v21  ;;  %1937 = vmatpush.bf16.msra.mxu2 %v4189_v18 }
  0xd7   : > { %v4859_v52 = vpop.f32.mrf.mxu2 }
  0xd8   : > { %v4729_v28 = vpop.f32.mrf.mxu0 }
  0xdb   : > { %3438 = vmatmul.msk.bf16.gmra.mxu0 %vm931_vm0, %v3210_v27  ;;  %v1017_v27 = vadd.f32 %v1016_v56, %v968_v19  ;;  %v4184_v56 = vld [vmem:[%s5387_s3 + $0xe0] sm:$0xff] }
  0xdd   : > { %v1066_v32 = vadd.f32 %v1065_v58, %v1017_v27  ;;  %v4869_v58 = vpop.f32.mrf.mxu3 }
  0xdf   : > { %v1115_v39 = vadd.f32 %v1114_v60, %v1066_v32  ;;  %v1069_v60 = vadd.f32 %v4793_v2, %v1020_v12  ;;  %v4884_v4 = vpop.f32.mrf.mxu2 }
  0xe0   : > { %v4732_v29 = vpop.f32.mrf.mxu0 }
  0xe1   : > { %v1118_v2 = vadd.f32 %v4803_v9, %v1069_v60  ;;  %v981_v60 = vadd.f32 %v4809_v11, %v4729_v28 }
  0xe5   : > { %v4896_v22 = vpop.f32.mrf.mxu3 }
  0xe8   : > { %v4745_v36 = vpop.f32.mrf.mxu0 }
  0xeb   : > { %3439 = vmatmul.msk.bf16.gmra.mxu0 %vm931_vm0, %v3230_v35  ;;  %v4186_v35 = vld [vmem:[%s5387_s3 + $0xf0] sm:$0xff] }
  0xec   : > { %1604 = vmatpush.bf16.msra.mxu1 %v4186_v35  ;;  %v4180_v35 = vld [vmem:[%s5387_s3 + $0xc0] sm:$0xff] }
  0xf0   : > { %v4748_v37 = vpop.f32.mrf.mxu0  ;;  %1605 = vmatpush.bf16.msra.mxu1 %v4185_v47 }
  0xf4   : > { %1606 = vmatpush.bf16.msra.mxu1 %v4184_v56  ;;  %v4210_v56 = vld [vmem:[%s5387_s3 + $0xb0] sm:$0xff] }
  0xf8   : > { %v4761_v44 = vpop.f32.mrf.mxu0  ;;  %1607 = vmatpush.bf16.msra.mxu1 %v4183_v0  ;;  %v4197_v0 = vld [vmem:[%s5387_s3 + $0x48] sm:$0xff] }
  0xfb   : > { %3440 = vmatmul.msk.bf16.gmra.mxu0 %vm931_vm0, %v3250_v43  ;;  %v4846_v43 = vpop.f32.mrf.mxu1 }
  0xfc   : > { %1608 = vmatpush.bf16.msra.mxu1 %v4182_v10  ;;  %v1027_v45 = vadd.f32 %v4846_v43, %v978_v8  ;;  %v1129_v43 = vpop.f32.mrf.mxu3 }
  0xfe   : > { %v1076_v49 = vadd.f32 %v4859_v52, %v1027_v45  ;;  %v4205_v45 = vld [vmem:[%s5387_s3 + $0x88] sm:$0xff] }
 0x100   : > { %v4764_v46 = vpop.f32.mrf.mxu0  ;;  %1609 = vmatpush.bf16.msra.mxu1 %v4181_v24  ;;  %v1125_v52 = vadd.f32 %v4869_v58, %v1076_v49  ;;  %v988_v49 = vadd.f32 %v4809_v11, %v4748_v37  ;;  %v4204_v37 = vld [vmem:[%s5387_s3 + $0x80] sm:$0xff] }
 0x104   : > { %1610 = vmatpush.bf16.msra.mxu1 %v4180_v35  ;;  %v4967_v10 = vpop.f32.mrf.mxu3  ;;  %v4206_v35 = vld [vmem:[%s5387_s3 + $0x90] sm:$0xff] }
 0x108   : > { %v4777_v55 = vpop.f32.mrf.mxu0 }
 0x10b   : > { %3441 = vmatmul.msk.bf16.gmra.mxu0 %vm931_vm0, %v3270_v54 }
 0x110   : > { %v4786_v61 = vpop.f32.mrf.mxu0 }
 0x118   : > { %v4801_v6 = vpop.f32.mrf.mxu0 }
 0x11b   : > { %3442 = vmatmul.msk.bf16.gmra.mxu0 %vm931_vm0, %v3290_v3  ;;  %v4881_v3 = vpop.f32.mrf.mxu1 }
 0x11c   : > { %v1030_v14 = vadd.f32 %v4881_v3, %v981_v60  ;;  %v4225_v60 = vld [vmem:[%s5387_s3 + $0x18] sm:$0xff] }
 0x120   : > { %v4811_v15 = vpop.f32.mrf.mxu0 }
 0x123   : > { %v1031_v32 = vpop.f32.mrf.mxu1 }
 0x128   : > { %v1161_v26 = vpop.f32.mrf.mxu0 }
 0x129   : > { %v1162_v40 = vadd.f32 %v1161_v26, %v1113_v33  ;;  %v976_v26 = vadd.f32 %v4809_v11, %v4713_v20  ;;  %v4200_v33 = vld [vmem:[%s5387_s3 + $0x60] sm:$0xff] }
 0x12a   : > { %v4188_v20 = vld [vmem:[%s5387_s3] sm:$0xff]  ;;  %1952 = vmatpush.bf16.msra.mxu3 %v4200_v33  ;;  %v4228_v33 = vld [vmem:[%s5387_s3 + $0x30] sm:$0xff] }
 0x12b   : > { %v1201_v50 = vmax.f32 %v1162_v40, 0.0  ;;  %v1025_v38 = vadd.f32 %v4828_v25, %v976_v26  ;;  %v1080_v40 = vpop.f32.mrf.mxu2  ;;  %1938 = vmatpush.bf16.msra.mxu2 %v4188_v20  ;;  %v4199_v25 = vld [vmem:[%s5387_s3 + $0x58] sm:$0xff]  ;;  %v4947_v12 = vpop.f32.mrf.mxu1  ;;  %v4214_v20 = vld [vmem:[%s5387_s3 + $0xd0] sm:$0xff] }
 0x12c   : > { %v4229_v26 = vld [vmem:[%s5387_s3 + $0x38] sm:$0xff] }
 0x12e   : > { %1953 = vmatpush.bf16.msra.mxu3 %v4199_v25 }
 0x130   : > { %v1163_v41 = vpop.f32.mrf.mxu0 }
 0x131   : > { %v1164_v42 = vadd.f32 %v1163_v41, %v1115_v39 }
 0x133   : > { %v1202_v51 = vmax.f32 %v1164_v42, 0.0  ;;  %v1074_v42 = vadd.f32 %v4830_v30, %v1025_v38  ;;  %v4219_v30 = vld [vmem:[%s5387_s3 + $0xf8] sm:$0xff]  ;;  %v4949_v58 = vpop.f32.mrf.mxu2  ;;  %v1036_v3 = vpop.f32.mrf.mxu1 }
 0x134   : > { %v1134_v38 = vpop.f32.mrf.mxu3 }
 0x135   : > { %v4317_v54 = vpack.c.bf16 %v1202_v51, %v1201_v50  ;;  %v4211_v50 = vld [vmem:[%s5387_s3 + $0xb8] sm:$0xff]  ;;  %v1123_v51 = vadd.f32 %v4838_v34, %v1074_v42  ;;  %v4227_v42 = vld [vmem:[%s5387_s3 + $0x28] sm:$0xff] }
 0x137   : > { %1557 = vmatmul.bf16.vlgmr.msrb.gmra.mxu1 %v4317_v54  ;;  %v4357_v39 = vunpack.c.h.b16 %v4317_v54  ;;  %v4198_v54 = vld [vmem:[%s5387_s3 + $0x50] sm:$0xff] }
 0x138   : > { %v1166_v59 = vpop.f32.mrf.mxu0  ;;  %1967 = vmatpush.bf16.msrb.mxu1 %v4211_v50  ;;  %1954 = vmatpush.bf16.msra.mxu3 %v4198_v54 }
 0x139   : > { %v1167_v17 = vadd.f32 %v1166_v59, %v1118_v2  ;;  %v983_v2 = vadd.f32 %v4809_v11, %v4732_v29  ;;  %v4208_v29 = vld [vmem:[%s5387_s3 + $0xa0] sm:$0xff] }
 0x13b   : > { %v1203_v7 = vmax.f32 %v1167_v17, 0.0  ;;  %v4216_v17 = vld [vmem:[%s5387_s3 + $0xe0] sm:$0xff]  ;;  %v1032_v23 = vadd.f32 %v1031_v32, %v983_v2  ;;  %v4224_v2 = vld [vmem:[%s5387_s3 + $0x10] sm:$0xff] }
 0x13c   : > { %1968 = vmatpush.bf16.msrb.mxu1 %v4210_v56  ;;  %1955 = vmatpush.bf16.msra.mxu3 %v4197_v0  ;;  %v1037_v56 = vadd.f32 %v1036_v3, %v988_v49  ;;  %v4240_v49 = vld [vmem:[%s5387_s3 + $0x90] sm:$0xff] }
 0x13d   : > { %v1081_v18 = vadd.f32 %v1080_v40, %v1032_v23  ;;  %v4235_v23 = vld [vmem:[%s5387_s3 + $0x68] sm:$0xff] }
 0x140   : > { %v1168_v19 = vpop.f32.mrf.mxu0  ;;  %1969 = vmatpush.bf16.msrb.mxu1 %v4209_v63 }
 0x141   : > { %v1169_v9 = vadd.f32 %v1168_v19, %v1120_v16  ;;  %v4196_v16 = vld [vmem:[%s5387_s3 + $0x40] sm:$0xff] }
 0x142   : > { %1956 = vmatpush.bf16.msra.mxu3 %v4196_v16 }
 0x143   : > { %v1204_v27 = vmax.f32 %v1169_v9, 0.0  ;;  %v1079_v9 = vadd.f32 %v4884_v4, %v1030_v14  ;;  %v4215_v4 = vld [vmem:[%s5387_s3 + $0xd8] sm:$0xff] }
 0x144   : > { %1970 = vmatpush.bf16.msrb.mxu1 %v4208_v29  ;;  %v991_v29 = vadd.f32 %v4809_v11, %v4761_v44 }
 0x145   : > { %v4911_v31 = vpack.c.bf16 %v1204_v27, %v1203_v7  ;;  %v4207_v7 = vld [vmem:[%s5387_s3 + $0x98] sm:$0xff]  ;;  %v1085_v27 = vpop.f32.mrf.mxu2  ;;  %v1128_v8 = vadd.f32 %v4896_v22, %v1079_v9  ;;  %v4223_v9 = vld [vmem:[%s5387_s3 + $0x8] sm:$0xff] }
 0x147   : > { %v4360_v21 = vunpack.c.l.b16 %v4911_v31  ;;  %v4361_v28 = vunpack.c.h.b16 %v4911_v31  ;;  %v1130_v31 = vadd.f32 %v1129_v43, %v1081_v18  ;;  %v993_v18 = vadd.f32 %v4809_v11, %v4764_v46  ;;  %v4242_v46 = vld [vmem:[%s5387_s3 + $0xa0] sm:$0xff] }
 0x148   : > { %v1171_v41 = vpop.f32.mrf.mxu0  ;;  %1971 = vmatpush.bf16.msrb.mxu1 %v4207_v7 }
 0x149   : > { %v1264_v47 = vpack.c.b16 %v4360_v21, %v4360_v21  ;;  %v1269_v48 = vpack.c.b16 %v4360_v21, %v4357_v39  ;;  %v1172_v53 = vadd.f32 %v1171_v41, %v1123_v51  ;;  %v1270_v24 = vpack.c.b16 %v4361_v28, %v4361_v28  ;;  %v4226_v51 = vld [vmem:[%s5387_s3 + $0x20] sm:$0xff]  ;;  %v4236_v28 = vld [vmem:[%s5387_s3 + $0x70] sm:$0xff] }
 0x14a   : > { %v986_v21 = vadd.f32 %v4809_v11, %v4745_v36 }
 0x14b   : > { %1562 = vmatmul.bf16.gmra.mxu1 %v1264_v47  ;;  %1575 = vmatmul.bf16.vlgmr.msrb.gmra.mxu2 %v1269_v48  ;;  %v1205_v62 = vmax.f32 %v1172_v53, 0.0  ;;  %v4213_v47 = vld [vmem:[%s5387_s3 + $0xc8] sm:$0xff]  ;;  %v1039_v48 = vpop.f32.mrf.mxu1 }
 0x14c   : > { %1985 = vmatpush.bf16.msrb.mxu2 %v4219_v30  ;;  %1972 = vmatpush.bf16.msrb.mxu1 %v4206_v35  ;;  %v1035_v50 = vadd.f32 %v4947_v12, %v986_v21  ;;  %v1040_v7 = vadd.f32 %v1039_v48, %v991_v29  ;;  %v4241_v21 = vld [vmem:[%s5387_s3 + $0x98] sm:$0xff]  ;;  %v4232_v48 = vld [vmem:[%s5387_s3 + $0x50] sm:$0xff] }
 0x14d   : > { %v1088_v36 = vpop.f32.mrf.mxu2 }
 0x14e   : > { %v1084_v54 = vadd.f32 %v4949_v58, %v1035_v50  ;;  %v4245_v58 = vld [vmem:[%s5387_s3 + $0xb8] sm:$0xff] }
 0x150   : > { %v1173_v34 = vpop.f32.mrf.mxu0  ;;  %1986 = vmatpush.bf16.msrb.mxu2 %v4218_v57  ;;  %1973 = vmatpush.bf16.msrb.mxu1 %v4205_v45 }
 0x151   : > { %v1174_v59 = vadd.f32 %v1173_v34, %v1125_v52  ;;  %v4212_v52 = vld [vmem:[%s5387_s3 + $0xc0] sm:$0xff]  ;;  %v1137_v34 = vpop.f32.mrf.mxu3 }
 0x153   : > { %v1206_v13 = vmax.f32 %v1174_v59, 0.0  ;;  %v1086_v59 = vadd.f32 %v1085_v27, %v1037_v56  ;;  %v1041_v0 = vpop.f32.mrf.mxu1  ;;  %v4234_v27 = vld [vmem:[%s5387_s3 + $0x60] sm:$0xff]  ;;  %v998_v56 = vadd.f32 %v4809_v11, %v4786_v61 }
 0x154   : > { %1987 = vmatpush.bf16.msrb.mxu2 %v4217_v1  ;;  %1974 = vmatpush.bf16.msrb.mxu1 %v4204_v37  ;;  %v4251_v37 = vld [vmem:[%s5387_s3 + $0xe8] sm:$0xff]  ;;  %v4238_v61 = vld [vmem:[%s5387_s3 + $0x80] sm:$0xff] }
 0x155   : > { %v4964_v5 = vpack.c.bf16 %v1206_v13, %v1205_v62  ;;  %v4237_v62 = vld [vmem:[%s5387_s3 + $0x78] sm:$0xff]  ;;  %v1133_v13 = vadd.f32 %v4967_v10, %v1084_v54  ;;  %v1135_v63 = vadd.f32 %v1134_v38, %v1086_v59  ;;  %v1090_v14 = vpop.f32.mrf.mxu2  ;;  %v4250_v59 = vld [vmem:[%s5387_s3 + $0xe0] sm:$0xff] }
 0x157   : > { %1593 = vmatmul.bf16.vlgmr.msrb.gmra.mxu3 %v4964_v5  ;;  %v4365_v30 = vunpack.c.h.b16 %v4964_v5 }
 0x158   : > { %v1176_v19 = vpop.f32.mrf.mxu0  ;;  %1988 = vmatpush.bf16.msrb.mxu2 %v4216_v17  ;;  %2318 = vmatpush.bf16.msrb.mxu3 %v4229_v26 }
 0x159   : > { %v1177_v32 = vadd.f32 %v1176_v19, %v1128_v8  ;;  %v1139_v3 = vpop.f32.mrf.mxu3 }
 0x15b   : > { %1580 = vmatmul.bf16.gmra.mxu2 %v1270_v24  ;;  %v1207_v40 = vmax.f32 %v1177_v32, 0.0  ;;  %v4243_v24 = vld [vmem:[%s5387_s3 + $0xa8] sm:$0xff]  ;;  %v1044_v8 = vpop.f32.mrf.mxu1  ;;  %v1089_v32 = vadd.f32 %v1088_v36, %v1040_v7 }
 0x15c   : > { %1989 = vmatpush.bf16.msrb.mxu2 %v4215_v4  ;;  %2319 = vmatpush.bf16.msrb.mxu3 %v4228_v33  ;;  %v4222_v4 = vld [vmem:[%s5387_s3] sm:$0xff]  ;;  %v1042_v33 = vadd.f32 %v1041_v0, %v993_v18 }
 0x15e   : > { %v1091_v38 = vadd.f32 %v1090_v14, %v1042_v33  ;;  %v4248_v14 = vld [vmem:[%s5387_s3 + $0xd0] sm:$0xff] }
 0x160   : > { %v1178_v39 = vpop.f32.mrf.mxu0  ;;  %1990 = vmatpush.bf16.msrb.mxu2 %v4214_v20  ;;  %2320 = vmatpush.bf16.msrb.mxu3 %v4227_v42  ;;  %v1093_v20 = vpop.f32.mrf.mxu2  ;;  %v1140_v42 = vadd.f32 %v1139_v3, %v1091_v38 }
 0x161   : > { %v1179_v22 = vadd.f32 %v1178_v39, %v1130_v31  ;;  %v4253_v39 = vld [vmem:[%s5387_s3 + $0xf8] sm:$0xff] }
 0x163   : > { %v1208_v41 = vmax.f32 %v1179_v22, 0.0  ;;  %v4233_v22 = vld [vmem:[%s5387_s3 + $0x58] sm:$0xff]  ;;  %v1046_v50 = vpop.f32.mrf.mxu1 }
 0x164   : > { %1991 = vmatpush.bf16.msrb.mxu2 %v4213_v47  ;;  %2321 = vmatpush.bf16.msrb.mxu3 %v4226_v51  ;;  %v4252_v47 = vld [vmem:[%s5387_s3 + $0xf0] sm:$0xff]  ;;  %v1047_v0 = vadd.f32 %v1046_v50, %v998_v56  ;;  %v4426_v56 = vld [vmem:[%s5388_s4] ss:$0 sm:$0xff] }
 0x165   : > { %v5013_v25 = vpack.c.bf16 %v1208_v41, %v1207_v40  ;;  %v1138_v40 = vadd.f32 %v1137_v34, %v1089_v32  ;;  %v1142_v41 = vpop.f32.mrf.mxu3 }
 0x167   : > { %v4368_v43 = vunpack.c.l.b16 %v5013_v25  ;;  %v4369_v44 = vunpack.c.h.b16 %v5013_v25 }
 0x168   : > { %v1181_v53 = vpop.f32.mrf.mxu0  ;;  %1992 = vmatpush.bf16.msrb.mxu2 %v4212_v52  ;;  %2322 = vmatpush.bf16.msrb.mxu3 %v4225_v60  ;;  %v4231_v52 = vld [vmem:[%s5387_s3 + $0x48] sm:$0xff]  ;;  %v1095_v54 = vpop.f32.mrf.mxu2  ;;  %v4230_v60 = vld [vmem:[%s5387_s3 + $0x40] sm:$0xff] }
 0x169   : > { %v1280_v57 = vpack.c.b16 %v4368_v43, %v4368_v43  ;;  %v1285_v12 = vpack.c.b16 %v4368_v43, %v4365_v30  ;;  %v1182_v1 = vadd.f32 %v1181_v53, %v1133_v13  ;;  %v1286_v35 = vpack.c.b16 %v4369_v44, %v4369_v44  ;;  %v4239_v53 = vld [vmem:[%s5387_s3 + $0x88] sm:$0xff] }
 0x16a   : > { %v996_v30 = vadd.f32 %v4809_v11, %v4777_v55  ;;  %v1003_v44 = vadd.f32 %v4809_v11, %v4811_v15 }
 0x16b   : > { %1598 = vmatmul.bf16.gmra.mxu3 %v1280_v57  ;;  %1611 = vmatmul.bf16.vlgmr.msra.gmra.mxu1 %v1285_v12  ;;  %v1209_v17 = vmax.f32 %v1182_v1, 0.0  ;;  %v1096_v1 = vadd.f32 %v1095_v54, %v1047_v0 }
 0x16c   : > { %1939 = vmatmul.bf16.vlgmr.msra.gmra.mxu2 %v4964_v5  ;;  %2336 = vmatpush.bf16.msra.mxu1 %v4237_v62  ;;  %v4244_v5 = vld [vmem:[%s5387_s3 + $0xb0] sm:$0xff]  ;;  %v1045_v55 = vadd.f32 %v1044_v8, %v996_v30 }
 0x16d   : > { %2354 = vmatpush.bf16.msra.mxu2 %v4245_v58  ;;  %2323 = vmatpush.bf16.msrb.mxu3 %v4224_v2  ;;  %v1144_v62 = vpop.f32.mrf.mxu3  ;;  %v4249_v2 = vld [vmem:[%s5387_s3 + $0xd8] sm:$0xff] }
 0x16e   : > { %v1094_v13 = vadd.f32 %v1093_v20, %v1045_v55 }
 0x170   : > { %v1183_v10 = vpop.f32.mrf.mxu0  ;;  %2337 = vmatpush.bf16.msra.mxu1 %v4236_v28  ;;  %v1049_v28 = vpop.f32.mrf.mxu1 }
 0x171   : > { %v1184_v16 = vadd.f32 %v1183_v10, %v1135_v63  ;;  %2355 = vmatpush.bf16.msra.mxu2 %v4244_v5  ;;  %2324 = vmatpush.bf16.msrb.mxu3 %v4223_v9  ;;  %v1143_v5 = vadd.f32 %v1142_v41, %v1094_v13  ;;  %v1098_v10 = vpop.f32.mrf.mxu2  ;;  %v4247_v9 = vld [vmem:[%s5387_s3 + $0xc8] sm:$0xff] }
 0x173   : > { %v1210_v19 = vmax.f32 %v1184_v16, 0.0  ;;  %v1145_v16 = vadd.f32 %v1144_v62, %v1096_v1 }
 0x174   : > { %2338 = vmatpush.bf16.msra.mxu1 %v4235_v23 }
 0x175   : > { %v5061_v26 = vpack.c.bf16 %v1210_v19, %v1209_v17  ;;  %2356 = vmatpush.bf16.msra.mxu2 %v4243_v24  ;;  %2325 = vmatpush.bf16.msrb.mxu3 %v4222_v4  ;;  %v1147_v23 = vpop.f32.mrf.mxu3  ;;  %v1001_v24 = vadd.f32 %v4809_v11, %v4801_v6  ;;  %v4246_v4 = vld [vmem:[%s5387_s3 + $0xc0] sm:$0xff] }
 0x177   : > { %v1050_v8 = vadd.f32 %v1049_v28, %v1001_v24 }
 0x178   : > { %v1186_v31 = vpop.f32.mrf.mxu0  ;;  %2339 = vmatpush.bf16.msra.mxu1 %v4234_v27  ;;  %v1051_v27 = vpop.f32.mrf.mxu1 }
 0x179   : > { %2357 = vmatpush.bf16.msra.mxu2 %v4242_v46  ;;  %v1187_v45 = vadd.f32 %v1186_v31, %v1138_v40  ;;  %v1100_v31 = vpop.f32.mrf.mxu2  ;;  %v1099_v33 = vadd.f32 %v1098_v10, %v1050_v8 }
 0x17b   : > { %1616 = vmatmul.bf16.gmra.mxu1 %v1286_v35  ;;  %1957 = vmatmul.bf16.vlgmr.msra.gmra.mxu3 %v1285_v12  ;;  %v1211_v43 = vmax.f32 %v1187_v45, 0.0  ;;  %v4381_v12 = vunpack.c.h.b16 %v5061_v26  ;;  %v1148_v15 = vadd.f32 %v1147_v23, %v1099_v33 }
 0x17c   : > { %1944 = vmatmul.bf16.gmra.mxu2 %v1280_v57  ;;  %2372 = vmatpush.bf16.msra.mxu3 %v4253_v39 }
 0x17d   : > { %2340 = vmatpush.bf16.msra.mxu1 %v4233_v22  ;;  %2358 = vmatpush.bf16.msra.mxu2 %v4241_v21  ;;  %v1149_v11 = vpop.f32.mrf.mxu3 }
 0x180   : > { %v1188_v25 = vpop.f32.mrf.mxu0  ;;  %2373 = vmatpush.bf16.msra.mxu3 %v4252_v47 }
 0x181   : > { %v1189_v36 = vadd.f32 %v1188_v25, %v1140_v42  ;;  %2341 = vmatpush.bf16.msra.mxu1 %v4232_v48  ;;  %2359 = vmatpush.bf16.msra.mxu2 %v4240_v49 }
 0x183   : > { %v1212_v51 = vmax.f32 %v1189_v36, 0.0 }
 0x184   : > { %2374 = vmatpush.bf16.msra.mxu3 %v4251_v37 }
 0x185   : > { %v4342_v57 = vpack.c.bf16 %v1212_v51, %v1211_v43  ;;  %2342 = vmatpush.bf16.msra.mxu1 %v4231_v52  ;;  %2360 = vmatpush.bf16.msra.mxu2 %v4239_v53 }
 0x187   : > { %v4384_v34 = vunpack.c.l.b16 %v4342_v57  ;;  %v4385_v46 = vunpack.c.h.b16 %v4342_v57 }
 0x188   : > { %v1191_v58 = vpop.f32.mrf.mxu0  ;;  %2375 = vmatpush.bf16.msra.mxu3 %v4250_v59 }
 0x189   : > { %v1667_v63 = vpack.c.b16 %v4384_v34, %v4381_v12  ;;  %2343 = vmatpush.bf16.msra.mxu1 %v4230_v60  ;;  %2361 = vmatpush.bf16.msra.mxu2 %v4238_v61  ;;  %v1192_v29 = vadd.f32 %v1191_v58, %v1143_v5  ;;  %v1662_v6 = vpack.c.b16 %v4384_v34, %v4384_v34 }
 0x18a   : > { %v1668_v20 = vpack.c.b16 %v4385_v46, %v4385_v46 }
 0x18b   : > { %1962 = vmatmul.bf16.gmra.mxu3 %v1286_v35  ;;  %1975 = vmatmul.bf16.vlgmr.msrb.gmra.mxu1 %v5061_v26  ;;  %v1213_v3 = vmax.f32 %v1192_v29, 0.0  ;;  %v1052_v35 = vadd.f32 %v1051_v27, %v1003_v44 }
 0x18c   : > { %1993 = vmatmul.bf16.vlgmr.msrb.gmra.mxu2 %v1667_v63  ;;  %2376 = vmatpush.bf16.msra.mxu3 %v4249_v2 }
 0x18d   : > { %v1101_v38 = vadd.f32 %v1100_v31, %v1052_v35  ;;  %v4427_v31 = vld [vmem:[%s5388_s4] ss:$0 sm:$0xff] }
 0x18f   : > { %v1150_v39 = vadd.f32 %v1149_v11, %v1101_v38 }
 0x190   : > { %v1193_v17 = vpop.f32.mrf.mxu0  ;;  %2377 = vmatpush.bf16.msra.mxu3 %v4248_v14 }
 0x191   : > { %v1194_v19 = vadd.f32 %v1193_v17, %v1145_v16 }
 0x193   : > { %v1214_v18 = vmax.f32 %v1194_v19, 0.0 }
 0x194   : > { %2378 = vmatpush.bf16.msra.mxu3 %v4247_v9 }
 0x195   : > { %v4347_v7 = vpack.c.bf16 %v1214_v18, %v1213_v3 }
 0x197   : > { %4403 = vst [vmem:[#allocation2 + $0x30] sm:$0xff] %v4347_v7  }
 0x198   : > { %v1196_v32 = vpop.f32.mrf.mxu0  ;;  %2379 = vmatpush.bf16.msra.mxu3 %v4246_v4 }
 0x199   : > { %v1197_v22 = vadd.f32 %v1196_v32, %v1148_v15 }
 0x19b   : > { %1980 = vmatmul.bf16.gmra.mxu1 %v1662_v6  ;;  %2326 = vmatmul.bf16.vlgmr.msrb.gmra.mxu3 %v5061_v26  ;;  %v1215_v41 = vmax.f32 %v1197_v22, 0.0 }
 0x19c   : > { %1998 = vmatmul.bf16.gmra.mxu2 %v1668_v20 }
 0x19e   : > { %v4220_v47 = vld [vmem:[#allocation2 + $0x30] sm:$0xff] }
 0x1a0   : > { %v1198_v21 = vpop.f32.mrf.mxu0 }
 0x1a1   : > { %v1199_v40 = vadd.f32 %v1198_v21, %v1150_v39 }
 0x1a3   : > { %v1216_v42 = vmax.f32 %v1199_v40, 0.0 }
 0x1a5   : > { %v4352_v45 = vpack.c.bf16 %v1216_v42, %v1215_v41 }
 0x1a7   : > { %4404 = vst [vmem:[#allocation2 + $0x38] sm:$0xff] %v4352_v45   ;;  %v4396_v49 = vunpack.c.l.b16 %v4352_v45  ;;  %v4397_v50 = vunpack.c.h.b16 %v4352_v45 }
 0x1a9   : > { %v2045_v36 = vpack.c.b16 %v4396_v49, %v4396_v49  ;;  %v2055_v43 = vpack.c.b16 %v4397_v50, %v4397_v50 }
 0x1ab   : > { %2331 = vmatmul.bf16.gmra.mxu3 %v1662_v6  ;;  %2344 = vmatmul.bf16.vlgmr.msra.gmra.mxu1 %v1667_v63 }
 0x1ac   : > { %2362 = vmatmul.bf16.vlgmr.msra.gmra.mxu2 %v4220_v47 }
 0x1ae   : > { %v4221_v25 = vld [vmem:[#allocation2 + $0x34] sm:$0xff] }
 0x1b4   : > { %v1558_v48 = vpop.f32.mrf.mxu1 }
 0x1b5   : > { %v1559_v57 = vadd.f32 %v4426_v56, %v1558_v48 }
 0x1bb   : > { %2349 = vmatmul.bf16.gmra.mxu1 %v1668_v20  ;;  %2380 = vmatmul.bf16.vlgmr.msra.gmra.mxu3 %v4221_v25 }
 0x1bc   : > { %2367 = vmatmul.bf16.gmra.mxu2 %v2045_v36  ;;  %v1560_v26 = vpop.f32.mrf.mxu1 }
 0x1bd   : > { %v1561_v62 = vadd.f32 %v4426_v56, %v1560_v26 }
 0x1c8   : > { %v1563_v30 = vpop.f32.mrf.mxu1 }
 0x1c9   : > { %v1564_v14 = vadd.f32 %v4426_v56, %v1563_v30 }
 0x1cb   : > { %2385 = vmatmul.bf16.gmra.mxu3 %v2055_v43 }
 0x1ce   : > { %v1576_v51 = vpop.f32.mrf.mxu2 }
 0x1cf   : > { %v1577_v55 = vadd.f32 %v1576_v51, %v1559_v57 }
 0x1d0   : > { %v1565_v37 = vpop.f32.mrf.mxu1 }
 0x1d6   : > { %v1578_v52 = vpop.f32.mrf.mxu2 }
 0x1d7   : > { %v1579_v13 = vadd.f32 %v1578_v52, %v1561_v62  ;;  %v4261_v62 = vld [vmem:[%s5389_s5 + $0x38] sm:$0xff] }
 0x1d8   : > { %2739 = vmatpush.bf16.msra.mxu0 %v4261_v62  ;;  %v4271_v62 = vld [vmem:[%s5389_s5 + $0x88] sm:$0xff] }
 0x1da   : > { %v1594_v53 = vpop.f32.mrf.mxu3 }
 0x1db   : > { %v1595_v59 = vadd.f32 %v1594_v53, %v1577_v55 }
 0x1de   : > { %v1581_v54 = vpop.f32.mrf.mxu2 }
 0x1df   : > { %v1582_v16 = vadd.f32 %v1581_v54, %v1564_v14 }
 0x1e2   : > { %v1596_v12 = vpop.f32.mrf.mxu3 }
 0x1e3   : > { %v1597_v1 = vadd.f32 %v1596_v12, %v1579_v13 }
 0x1e6   : > { %v1583_v34 = vpop.f32.mrf.mxu2 }
 0x1e8   : > { %v1612_v60 = vpop.f32.mrf.mxu1 }
 0x1e9   : > { %v1613_v61 = vadd.f32 %v1612_v60, %v1595_v59 }
 0x1eb   : > { %v1621_v58 = vmax.f32 %v1613_v61, 0.0 }
 0x1ed   : > { %v1624_v0 = vpack.c.bf16 %v1621_v58, %v1621_v58 }
 0x1ee   : > { %v1599_v63 = vpop.f32.mrf.mxu3 }
 0x1ef   : > { %1628 = vst.msk [vmem:[#allocation3] sm:$0xf] %vm1627_vm1, %v1624_v0  ;;  %v1940_v2 = vpop.f32.mrf.mxu2  ;;  %v1600_v19 = vadd.f32 %v1599_v63, %v1582_v16  ;;  %v4260_v16 = vld [vmem:[%s5389_s5 + $0x30] sm:$0xff] }
 0x1f0   : > { %v1614_v28 = vpop.f32.mrf.mxu1  ;;  %v1941_v6 = vadd.f32 %v4427_v31, %v1940_v2  ;;  %v4428_v2 = vld [vmem:[%s5388_s4] ss:$0 sm:$0xff]  ;;  %2740 = vmatpush.bf16.msra.mxu0 %v4260_v16 }
 0x1f1   : > { %v1615_v5 = vadd.f32 %v1614_v28, %v1597_v1 }
 0x1f3   : > { %v1622_v10 = vmax.f32 %v1615_v5, 0.0 }
 0x1f5   : > { %v1625_v29 = vpack.c.bf16 %v1622_v10, %v1622_v10 }
 0x1f6   : > { %v1601_v17 = vpop.f32.mrf.mxu3 }
 0x1f7   : > { %1629 = vst.msk [vmem:[#allocation3 + $0x4] sm:$0xf] %vm1627_vm1, %v1625_v29  ;;  %v1942_v9 = vpop.f32.mrf.mxu2  ;;  %v4259_v17 = vld [vmem:[%s5389_s5 + $0x28] sm:$0xff] }
 0x1f8   : > { %v1617_v23 = vpop.f32.mrf.mxu1  ;;  %v1943_v21 = vadd.f32 %v4427_v31, %v1942_v9  ;;  %2741 = vmatpush.bf16.msra.mxu0 %v4259_v17  ;;  %v4279_v17 = vld [vmem:[%s5389_s5 + $0xc8] sm:$0xff] }
 0x1f9   : > { %v1618_v24 = vadd.f32 %v1617_v23, %v1600_v19 }
 0x1fb   : > { %v1623_v3 = vmax.f32 %v1618_v24, 0.0 }
 0x1fd   : > { %v1626_v18 = vpack.c.bf16 %v1623_v3, %v1623_v3  ;;  %v4258_v3 = vld [vmem:[%s5389_s5 + $0x20] sm:$0xff] }
 0x1fe   : > { %v1958_v44 = vpop.f32.mrf.mxu3  ;;  %v2400_v7 = vld [vmem:[#allocation3 + $0x4] sm:$0xf]  ;;  %2742 = vmatpush.bf16.msra.mxu0 %v4258_v3 }
 0x1ff   : > { %1630 = vst.msk [vmem:[#allocation3 + $0x8] sm:$0xf] %vm1627_vm1, %v1626_v18  ;;  %v1945_v4 = vpop.f32.mrf.mxu2  ;;  %v2409_v27 = vunpack.c.l.b16 %v2400_v7  ;;  %v1959_v20 = vadd.f32 %v1958_v44, %v1941_v6 }
 0x200   : > { %v1619_v46 = vpop.f32.mrf.mxu1  ;;  %v1946_v36 = vadd.f32 %v4427_v31, %v1945_v4 }
 0x201   : > { %v2410_v8 = vpack.c.b16 %v2409_v27, %v2409_v27  ;;  %v4257_v46 = vld [vmem:[%s5389_s5 + $0x18] sm:$0xff] }
 0x202   : > { %2743 = vmatpush.bf16.msra.mxu0 %v4257_v46  ;;  %v4006_v46 = vld [vmem:[%s5391_s7 + $0x30] sm:$0xf] }
 0x203   : > { %2411 = vrot.lane.b32.xlu1 %v2410_v8, %s4439_s26 }
 0x206   : > { %v1960_v32 = vpop.f32.mrf.mxu3 }
 0x207   : > { %v1947_v33 = vpop.f32.mrf.mxu2  ;;  %v1961_v41 = vadd.f32 %v1960_v32, %v1943_v21 }
 0x208   : > { %v1976_v35 = vpop.f32.mrf.mxu1 }
 0x209   : > { %v1977_v38 = vadd.f32 %v1976_v35, %v1959_v20  ;;  %v4256_v35 = vld [vmem:[%s5389_s5 + $0x10] sm:$0xff] }
 0x20a   : > { %2744 = vmatpush.bf16.msra.mxu0 %v4256_v35  ;;  %v3998_v35 = vld [vmem:[%s5391_s7 + $0x20] sm:$0xf] }
 0x20e   : > { %v1963_v11 = vpop.f32.mrf.mxu3 }
 0x20f   : > { %v1994_v15 = vpop.f32.mrf.mxu2  ;;  %v1964_v50 = vadd.f32 %v1963_v11, %v1946_v36  ;;  %v4268_v36 = vld [vmem:[%s5389_s5 + $0x70] sm:$0xff] }
 0x210   : > { %v1995_v39 = vadd.f32 %v1994_v15, %v1977_v38  ;;  %v1978_v22 = vpop.f32.mrf.mxu1  ;;  %v4255_v15 = vld [vmem:[%s5389_s5 + $0x8] sm:$0xff] }
 0x211   : > { %v1979_v45 = vadd.f32 %v1978_v22, %v1961_v41  ;;  %2745 = vmatpush.bf16.msra.mxu0 %v4255_v15  ;;  %v4000_v15 = vld [vmem:[%s5391_s7 + $0x28] sm:$0xf0] }
 0x212   : > { %v2003_v40 = vmax.f32 %v1995_v39, 0.0 }
 0x214   : > { %v2006_v42 = vpack.c.bf16 %v2003_v40, %v2003_v40  ;;  %v4254_v40 = vld [vmem:[%s5389_s5] sm:$0xff] }
 0x215   : > { %2746 = vmatpush.bf16.msra.mxu0 %v4254_v40 }
 0x216   : > { %2009 = vst.msk [vmem:[#allocation3 + $0xc] sm:$0xf] %vm1627_vm1, %v2006_v42  ;;  %v1965_v47 = vpop.f32.mrf.mxu3 }
 0x217   : > { %v1996_v48 = vpop.f32.mrf.mxu2 }
 0x218   : > { %v1997_v49 = vadd.f32 %v1996_v48, %v1979_v45  ;;  %v1981_v25 = vpop.f32.mrf.mxu1  ;;  %v4269_v48 = vld [vmem:[%s5389_s5 + $0x78] sm:$0xff] }
 0x219   : > { %v1982_v51 = vadd.f32 %v1981_v25, %v1964_v50  ;;  %2752 = vmatpush.bf16.msrb.mxu1 %v4269_v48  ;;  %v4276_v50 = vld [vmem:[%s5389_s5 + $0xb0] sm:$0xff] }
 0x21a   : > { %v2004_v26 = vmax.f32 %v1997_v49, 0.0  ;;  %v4292_v48 = vld [vmem:[%s5391_s7 + $0x14] sm:$0xf] }
 0x21c   : > { %v2007_v30 = vpack.c.bf16 %v2004_v26, %v2004_v26  ;;  %v4277_v26 = vld [vmem:[%s5389_s5 + $0xb8] sm:$0xff] }
 0x21d   : > { %v2402_v43 = vld [vmem:[#allocation3 + $0xc] sm:$0xf]  ;;  %2765 = vmatpush.bf16.msrb.mxu2 %v4277_v26  ;;  %2753 = vmatpush.bf16.msrb.mxu1 %v4268_v36  ;;  %v3992_v36 = vld [vmem:[%s5391_s7 + $0x18] sm:$0xf0] }
 0x21e   : > { %2010 = vst.msk [vmem:[#allocation3 + $0x10] sm:$0xf] %vm1627_vm1, %v2007_v30  ;;  %v2327_v37 = vpop.f32.mrf.mxu3  ;;  %v2414_v52 = vunpack.c.l.b16 %v2402_v43  ;;  %v4267_v30 = vld [vmem:[%s5389_s5 + $0x68] sm:$0xff]  ;;  %v3995_v26 = vor.u32 %v4292_v48, %v3992_v36 }
 0x21f   : > { %v1999_v53 = vpop.f32.mrf.mxu2  ;;  %v2328_v10 = vadd.f32 %v4428_v2, %v2327_v37  ;;  %v4275_v43 = vld [vmem:[%s5389_s5 + $0xa8] sm:$0xff]  ;;  %v4274_v37 = vld [vmem:[%s5389_s5 + $0xa0] sm:$0xff] }
 0x220   : > { %v2000_v54 = vadd.f32 %v1999_v53, %v1982_v51  ;;  %v1983_v56 = vpop.f32.mrf.mxu1  ;;  %v2415_v57 = vpack.c.b16 %v2414_v52, %v2414_v52  ;;  %v4266_v51 = vld [vmem:[%s5389_s5 + $0x60] sm:$0xff]  ;;  %v4265_v52 = vld [vmem:[%s5389_s5 + $0x58] sm:$0xff]  ;;  %v4264_v53 = vld [vmem:[%s5389_s5 + $0x50] sm:$0xff] }
 0x221   : > { %2766 = vmatpush.bf16.msrb.mxu2 %v4276_v50  ;;  %2754 = vmatpush.bf16.msrb.mxu1 %v4267_v30  ;;  %v4262_v56 = vld [vmem:[%s5389_s5 + $0x40] sm:$0xff]  ;;  %v4291_v30 = vld [vmem:[%s5391_s7 + $0x4] sm:$0xf0] }
 0x222   : > { %v2005_v55 = vmax.f32 %v2000_v54, 0.0  ;;  %2416 = vrot.lane.b32.xlu0 %v2415_v57, %s4439_s26  ;;  %v4263_v54 = vld [vmem:[%s5389_s5 + $0x48] sm:$0xff]  ;;  %v3982_v50 = vld [vmem:[%s5391_s7] sm:$0xf] }
 0x224   : > { %v2008_v12 = vpack.c.bf16 %v2005_v55, %v2005_v55  ;;  %v2399_v55 = vld [vmem:[#allocation3] sm:$0xf] }
 0x225   : > { %2767 = vmatpush.bf16.msrb.mxu2 %v4275_v43  ;;  %2755 = vmatpush.bf16.msrb.mxu1 %v4266_v51  ;;  %v4290_v43 = vld [vmem:[%s5391_s7 + $0x4] sm:$0xf]  ;;  %v3983_v51 = vor.u32 %v4291_v30, %v3982_v50 }
 0x226   : > { %2011 = vst.msk [vmem:[#allocation3 + $0x14] sm:$0xf] %vm1627_vm1, %v2008_v12  ;;  %v2329_v34 = vpop.f32.mrf.mxu3  ;;  %v4273_v12 = vld [vmem:[%s5389_s5 + $0x98] sm:$0xff] }
 0x227   : > { %v2001_v59 = vpop.f32.mrf.mxu2  ;;  %v2330_v44 = vadd.f32 %v4428_v2, %v2329_v34  ;;  %v4289_v34 = vld [vmem:[%s5389_s5 + $0x118] sm:$0xff] }
 0x228   : > { %v2345_v60 = vpop.f32.mrf.mxu1 }
 0x229   : > { %v2346_v29 = vadd.f32 %v2345_v60, %v2328_v10  ;;  %2768 = vmatpush.bf16.msrb.mxu2 %v4274_v37  ;;  %2756 = vmatpush.bf16.msrb.mxu1 %v4265_v52  ;;  %v4272_v60 = vld [vmem:[%s5389_s5 + $0x90] sm:$0xff]  ;;  %v4281_v10 = vld [vmem:[%s5389_s5 + $0xd8] sm:$0xff]  ;;  %v3984_v37 = vld [vmem:[%s5391_s7 + $0x8] sm:$0xf0] }
 0x22a   : > { %v3987_v52 = vor.u32 %v4290_v43, %v3984_v37 }
 0x22d   : > { %v2404_v61 = vld [vmem:[#allocation3 + $0x14] sm:$0xf]  ;;  %2757 = vmatpush.bf16.msrb.mxu1 %v4264_v53  ;;  %2769 = vmatpush.bf16.msrb.mxu2 %v4273_v12  ;;  %v4305_v53 = vld [vmem:[%s5393_s9 + $0x38] sm:$0xff]  ;;  %v4311_v12 = vld [vmem:[%s5393_s9 + $0x68] sm:$0xff] }
 0x22e   : > { %v2332_v58 = vpop.f32.mrf.mxu3  ;;  %v2419_v13 = vunpack.c.l.b16 %v2404_v61  ;;  %v4288_v61 = vld [vmem:[%s5389_s5 + $0x110] sm:$0xff] }
 0x22f   : > { %v2363_v0 = vpop.f32.mrf.mxu2  ;;  %v2333_v6 = vadd.f32 %v4428_v2, %v2332_v58  ;;  %v4287_v58 = vld [vmem:[%s5389_s5 + $0x108] sm:$0xff] }
 0x230   : > { %v2347_v63 = vpop.f32.mrf.mxu1  ;;  %v2420_v1 = vpack.c.b16 %v2419_v13, %v2419_v13  ;;  %v2364_v19 = vadd.f32 %v2363_v0, %v2346_v29  ;;  %v4270_v13 = vld [vmem:[%s5389_s5 + $0x80] sm:$0xff]  ;;  %v4283_v2 = vld [vmem:[%s5389_s5 + $0xe8] sm:$0xff]  ;;  %v4280_v29 = vld [vmem:[%s5389_s5 + $0xd0] sm:$0xff] }
 0x231   : > { %v2348_v4 = vadd.f32 %v2347_v63, %v2330_v44  ;;  %2758 = vmatpush.bf16.msrb.mxu1 %v4263_v54  ;;  %2770 = vmatpush.bf16.msrb.mxu2 %v4272_v60  ;;  %v4286_v0 = vld [vmem:[%s5389_s5 + $0x100] sm:$0xff]  ;;  %v4285_v63 = vld [vmem:[%s5389_s5 + $0xf8] sm:$0xff] }
 0x232   : > { %2421 = vrot.lane.b32.xlu0 %v2420_v1, %s4439_s26  ;;  %2778 = vmatpush.bf16.msrb.mxu3 %v4285_v63  ;;  %v4284_v1 = vld [vmem:[%s5389_s5 + $0xf0] sm:$0xff]  ;;  %v4313_v54 = vld [vmem:[%s5393_s9 + $0x78] sm:$0xff]  ;;  %v4429_v60 = vld [vmem:[%s5390_s6] ss:$0 sm:$0xff] }
 0x233   : > { %3042 = vmatpush.bf16.msrb.mxu0 %v4313_v54 }
 0x235   : > { %2759 = vmatpush.bf16.msrb.mxu1 %v4262_v56  ;;  %2771 = vmatpush.bf16.msrb.mxu2 %v4271_v62  ;;  %v4304_v56 = vld [vmem:[%s5393_s9 + $0x30] sm:$0xff]  ;;  %v4309_v62 = vld [vmem:[%s5393_s9 + $0x58] sm:$0xff] }
 0x236   : > { %v2334_v28 = vpop.f32.mrf.mxu3  ;;  %2779 = vmatpush.bf16.msrb.mxu3 %v4284_v1 }
 0x237   : > { %v2365_v5 = vpop.f32.mrf.mxu2  ;;  %v4282_v28 = vld [vmem:[%s5389_s5 + $0xe0] sm:$0xff] }
 0x238   : > { %v2350_v14 = vpop.f32.mrf.mxu1  ;;  %v2366_v8 = vadd.f32 %v2365_v5, %v2348_v4 }
 0x239   : > { %v2351_v38 = vadd.f32 %v2350_v14, %v2333_v6  ;;  %2795 = vmatpush.bf16.msra.mxu1 %v4289_v34  ;;  %2772 = vmatpush.bf16.msrb.mxu2 %v4270_v13  ;;  %v2401_v14 = vld [vmem:[#allocation3 + $0x8] sm:$0xf]  ;;  %v4302_v34 = vld [vmem:[%s5393_s9 + $0x20] sm:$0xff]  ;;  %v4300_v13 = vld [vmem:[%s5393_s9 + $0x10] sm:$0xff] }
 0x23a   : > { %2780 = vmatpush.bf16.msrb.mxu3 %v4283_v2  ;;  %v4295_v6 = vld [vmem:[%s5391_s7 + $0x24] sm:$0xf0] }
 0x23d   : > { %2796 = vmatpush.bf16.msra.mxu1 %v4288_v61  ;;  %v4301_v61 = vld [vmem:[%s5393_s9 + $0x18] sm:$0xff] }
 0x23e   : > { %v2381_v9 = vpop.f32.mrf.mxu3  ;;  %2781 = vmatpush.bf16.msrb.mxu3 %v4282_v28 }
 0x23f   : > { %v2368_v23 = vpop.f32.mrf.mxu2  ;;  %v2382_v24 = vadd.f32 %v2381_v9, %v2364_v19  ;;  %v4278_v19 = vld [vmem:[%s5389_s5 + $0xc0] sm:$0xff]  ;;  %v2403_v9 = vld [vmem:[#allocation3 + $0x10] sm:$0xf] }
 0x240   : > { %v2352_v18 = vpop.f32.mrf.mxu1  ;;  %v2369_v39 = vadd.f32 %v2368_v23, %v2351_v38 }
 0x241   : > { %v2390_v7 = vmax.f32 %v2382_v24, 0.0  ;;  %2797 = vmatpush.bf16.msra.mxu1 %v4287_v58 }
 0x242   : > { %2782 = vmatpush.bf16.msrb.mxu3 %v4281_v10 }
 0x243   : > { %v2393_v27 = vpack.c.bf16 %v2390_v7, %v2390_v7 }
 0x245   : > { %2396 = vst.msk [vmem:[#allocation3 + $0x18] sm:$0xf] %vm1627_vm1, %v2393_v27  ;;  %2798 = vmatpush.bf16.msra.mxu1 %v4286_v0 }
 0x246   : > { %v2383_v31 = vpop.f32.mrf.mxu3  ;;  %2783 = vmatpush.bf16.msrb.mxu3 %v4280_v29  ;;  %v4308_v29 = vld [vmem:[%s5393_s9 + $0x50] sm:$0xff] }
 0x247   : > { %v2370_v32 = vpop.f32.mrf.mxu2  ;;  %v2384_v33 = vadd.f32 %v2383_v31, %v2366_v8  ;;  %v4297_v8 = vld [vmem:[%s5391_s7 + $0x34] sm:$0xf0]  ;;  %v4296_v31 = vld [vmem:[%s5391_s7 + $0x34] sm:$0xf] }
 0x248   : > { %v4007_v32 = vor.u32 %v4297_v8, %v4006_v46 }
 0x249   : > { %v2391_v20 = vmax.f32 %v2384_v33, 0.0  ;;  %v4008_v33 = vld [vmem:[%s5391_s7 + $0x38] sm:$0xf0] }
 0x24a   : > { %2784 = vmatpush.bf16.msrb.mxu3 %v4279_v17  ;;  %v4011_v38 = vor.u32 %v4296_v31, %v4008_v33  ;;  %v4298_v17 = vld [vmem:[%s5393_s9] sm:$0xff] }
 0x24b   : > { %v2394_v11 = vpack.c.bf16 %v2391_v20, %v2391_v20 }
 0x24c   : > { %v2405_v18 = vld [vmem:[#allocation3 + $0x18] sm:$0xf]  ;;  %2880 = vmatpush.bf16.msra.mxu2 %v4011_v38  ;;  %v4430_v38 = vld [vmem:[%s5394_s10] ss:$0 sm:$0xff] }
 0x24d   : > { %2397 = vst.msk [vmem:[#allocation3 + $0x1c] sm:$0xf] %vm1627_vm1, %v2394_v11  ;;  %v4294_v11 = vld [vmem:[%s5391_s7 + $0x24] sm:$0xf] }
 0x24e   : > { %v2386_v22 = vpop.f32.mrf.mxu3  ;;  %2785 = vmatpush.bf16.msrb.mxu3 %v4278_v19  ;;  %v4307_v19 = vld [vmem:[%s5393_s9 + $0x48] sm:$0xff] }
 0x24f   : > { %v2387_v21 = vadd.f32 %v2386_v22, %v2369_v39  ;;  %v3999_v39 = vor.u32 %v4295_v6, %v3998_v35  ;;  %v4003_v22 = vor.u32 %v4294_v11, %v4000_v15 }
 0x251   : > { %v2392_v41 = vmax.f32 %v2387_v21, 0.0  ;;  %2881 = vmatpush.bf16.msra.mxu2 %v4003_v22 }
 0x252   : > { %3029 = vmatpush.bf16.msra.mxu3 %v4305_v53 }
 0x253   : > { %v2395_v42 = vpack.c.bf16 %v2392_v41, %v2392_v41 }
 0x254   : > { %v2406_v45 = vld [vmem:[#allocation3 + $0x1c] sm:$0xf] }
 0x255   : > { %2398 = vst.msk [vmem:[#allocation3 + $0x20] sm:$0xf] %vm1627_vm1, %v2395_v42  ;;  %v2424_v47 = vunpack.c.l.b16 %v2406_v45  ;;  %v3990_v45 = vld [vmem:[%s5391_s7 + $0x10] sm:$0xf]  ;;  %2882 = vmatpush.bf16.msra.mxu2 %v3995_v26 }
 0x256   : > { %v2388_v49 = vpop.f32.mrf.mxu3  ;;  %3030 = vmatpush.bf16.msra.mxu3 %v4304_v56 }
 0x257   : > { %v2425_v25 = vpack.c.b16 %v2424_v47, %v2424_v47  ;;  %v4293_v47 = vld [vmem:[%s5391_s7 + $0x14] sm:$0xf0] }
 0x259   : > { %2426 = vrot.lane.b32.xlu1 %v2425_v25, %s4439_s26  ;;  %v3991_v25 = vor.u32 %v4293_v47, %v3990_v45  ;;  %2883 = vmatpush.bf16.msra.mxu2 %v3987_v52 }
 0x25c   : > { %v2407_v3 = vld [vmem:[#allocation3 + $0x20] sm:$0xf] }
 0x275   : > { %v2412_v57 = vpop.permute.xlu1 %2411 }
 0x276   : > { %v2430_v59 = vsel %vm931_vm0, %v2399_v55, %v2412_v57  ;;  %v4312_v57 = vld [vmem:[%s5393_s9 + $0x70] sm:$0xff]  ;;  %v4303_v55 = vld [vmem:[%s5393_s9 + $0x28] sm:$0xff] }
 0x277   : > { %2747 = vmatmul.bf16.vlgmr.msra.gmra.mxu0 %v2430_v59  ;;  %3031 = vmatpush.bf16.msra.mxu3 %v4303_v55  ;;  %v4310_v59 = vld [vmem:[%s5393_s9 + $0x60] sm:$0xff] }
 0x278   : > { %3043 = vmatpush.bf16.msrb.mxu0 %v4312_v57 }
 0x27b   : > { %3032 = vmatpush.bf16.msra.mxu3 %v4302_v34 }
 0x27c   : > { %3044 = vmatpush.bf16.msrb.mxu0 %v4311_v12 }
 0x27f   : > { %3033 = vmatpush.bf16.msra.mxu3 %v4301_v61 }
 0x280   : > { %3045 = vmatpush.bf16.msrb.mxu0 %v4310_v59 }
 0x283   : > { %3034 = vmatpush.bf16.msra.mxu3 %v4300_v13 }
 0x284   : > { %3046 = vmatpush.bf16.msrb.mxu0 %v4309_v62 }
 0x288   : > { %3047 = vmatpush.bf16.msrb.mxu0 %v4308_v29 }
 0x28c   : > { %3048 = vmatpush.bf16.msrb.mxu0 %v4307_v19 }
 0x294   : > { %v2417_v5 = vpop.permute.xlu0 %2416 }
 0x295   : > { %v2434_v16 = vsel %vm931_vm0, %v2401_v14, %v2417_v5 }
 0x296   : > { %2760 = vmatmul.bf16.vlgmr.msrb.gmra.mxu1 %v2434_v16  ;;  %v4299_v16 = vld [vmem:[%s5393_s9 + $0x8] sm:$0xff] }
 0x297   : > { %2867 = vmatpush.bf16.msrb.mxu1 %v4007_v32  ;;  %3035 = vmatpush.bf16.msra.mxu3 %v4299_v16 }
 0x29b   : > { %2868 = vmatpush.bf16.msrb.mxu1 %v3999_v39  ;;  %3036 = vmatpush.bf16.msra.mxu3 %v4298_v17 }
 0x29f   : > { %2869 = vmatpush.bf16.msrb.mxu1 %v3991_v25 }
 0x2a3   : > { %2870 = vmatpush.bf16.msrb.mxu1 %v3983_v51 }
 0x2a4   : > { %v2422_v23 = vpop.permute.xlu0 %2421 }
 0x2a5   : > { %v2438_v24 = vsel %vm931_vm0, %v2403_v9, %v2422_v23  ;;  %v4306_v9 = vld [vmem:[%s5393_s9 + $0x40] sm:$0xff] }
 0x2a6   : > { %2773 = vmatmul.bf16.vlgmr.msrb.gmra.mxu2 %v2438_v24  ;;  %3979 = vmatmul.msk.bf16.vlgmr.msra.gmra.mxu1 %vm931_vm0, %v2407_v3  ;;  %v2814_v23 = vld [vmem:[%s5392_s8] sm:$0x3] }
 0x2a7   : > { %3049 = vmatpush.bf16.msrb.mxu0 %v4306_v9  ;;  %v2816_v24 = vperm.slane %v2814_v23, 0 }
 0x2cb   : > { %v2427_v44 = vpop.permute.xlu1 %2426 }
 0x2cc   : > { %v2442_v7 = vsel %vm931_vm0, %v2405_v18, %v2427_v44 }
 0x2cd   : > { %2786 = vmatmul.bf16.vlgmr.msrb.gmra.mxu3 %v2442_v7  ;;  %v2817_v7 = vperm.slane %v2814_v23, 1 }
 0x2f4   : > { %v2748_v4 = vpop.f32.mrf.mxu0 }
 0x2f5   : > { %v2749_v58 = vadd.f32 %v4429_v60, %v2748_v4 }
 0x2fc   : > { %v2750_v27 = vpop.f32.mrf.mxu0 }
 0x313   : > { %v2761_v20 = vpop.f32.mrf.mxu1 }
 0x314   : > { %v2762_v0 = vadd.f32 %v2761_v20, %v2749_v58  ;;  %v3055_v20 = vlaneseq }
 0x316   : > { %v3056_v11 = vand.u32 127, %v3055_v20 }
 0x318   : > { %vm3057_vm4 = vcmp.lt.s32.totalorder %v3056_v11, 4  ;;  %vm3062_vm5 = vcmp.eq.s32.totalorder %v3056_v11, 4 }
 0x31b   : > { %v2763_v21 = vpop.f32.mrf.mxu1 }
 0x323   : > { %v2800_v40 = vpop.f32.mrf.mxu1 }
 0x329   : > { %v2774_v41 = vpop.f32.mrf.mxu2 }
 0x32a   : > { %v2775_v63 = vadd.f32 %v2774_v41, %v2762_v0 }
 0x32b   : > { %v2802_v42 = vpop.f32.mrf.mxu1 }
 0x331   : > { %v2776_v49 = vpop.f32.mrf.mxu2 }
 0x350   : > { %v2787_v1 = vpop.f32.mrf.mxu3 }
 0x351   : > { %v2788_v2 = vadd.f32 %v2787_v1, %v2775_v63 }
 0x353   : > { %v2801_v28 = vadd.f32 %v2800_v40, %v2788_v2 }
 0x355   : > { %v2804_v5 = vmax.f32 %v2801_v28, 0.0 }
 0x357   : > { %v2805_v14 = vpack.c.bf16 %v2804_v5, %v2804_v5 }
 0x358   : > { %v2789_v10 = vpop.f32.mrf.mxu3 }
 0x359   : > { %4012 = vmatmul.msk.bf16.vlgmr.msrb.gmra.mxu1 %vm931_vm0, %v2805_v14  ;;  %4013 = vmatmul.msk.bf16.vlgmr.msra.gmra.mxu2 %vm931_vm0, %v2805_v14 }
 0x3d6   : > { %v2872_v3 = vpop.f32.mrf.mxu1 }
 0x3d7   : > { %v2873_v18 = vadd.f32 %v2872_v3, %v2816_v24 }
 0x3d9   : > { %vm2889_vm2 = vcmp.ge.f32.partialorder %v2873_v18, 0.0  ;;  %v2891_v44 = vmul.f32 0.01, %v2873_v18 }
 0x3db   : > { %v2893_v4 = vsel %vm2889_vm2, %v2873_v18, %v2891_v44 }
 0x3dc   : > { %v2895_v27 = vpack.c.bf16 %v2893_v4, %v2893_v4  ;;  %v2885_v46 = vpop.f32.mrf.mxu2 }
 0x3dd   : > { %v2886_v8 = vadd.f32 %v2885_v46, %v2817_v7 }
 0x3de   : > { %v2874_v31 = vpop.f32.mrf.mxu1  ;;  %3037 = vmatmul.bf16.vlgmr.msra.gmra.mxu3 %v2895_v27 }
 0x3df   : > { %vm2890_vm3 = vcmp.ge.f32.partialorder %v2886_v8, 0.0  ;;  %v2892_v32 = vmul.f32 0.01, %v2886_v8 }
 0x3e1   : > { %v2894_v33 = vsel %vm2890_vm3, %v2886_v8, %v2892_v32 }
 0x3e2   : > { %v2896_v35 = vpack.c.bf16 %v2894_v33, %v2894_v33 }
 0x3e4   : > { %v2887_v6 = vpop.f32.mrf.mxu2  ;;  %3050 = vmatmul.bf16.vlgmr.msrb.gmra.mxu0 %v2896_v35 }
 0x461   : > { %v3038_v15 = vpop.f32.mrf.mxu3  ;;  %v3051_v39 = vpop.f32.mrf.mxu0 }
 0x462   : > { %v3039_v22 = vadd.f32 %v4430_v38, %v3038_v15 }
 0x464   : > { %v3052_v21 = vadd.f32 %v3051_v39, %v3039_v22 }
 0x466   : > { %v3058_v40 = vsel %vm3057_vm4, %v3052_v21, 0.0  ;;  %v3063_v45 = vsel %vm3062_vm5, %v3052_v21, 0.0 }
 0x467   : > { %3059 = vadd.xlane.f32.xlu2 %v3058_v40 }
 0x469   : > { %v3040_v41 = vpop.f32.mrf.mxu3  ;;  %v3053_v42 = vpop.f32.mrf.mxu0 }
 0x46f   : > { %3064 = vadd.xlane.f32.xlu2 %v3063_v45 }
 0x4da   : > { %v3060_v47 = vpop.xlane.xlu2 %3059 }
 0x4db   : > { %v3061_v48 = vmul.f32 0.25, %v3060_v47 }
 0x4dd   : > { %v3066_v49 = vsub.f32 %v3052_v21, %v3061_v48 }
 0x4e2   : > { %v3065_v25 = vpop.xlane.xlu2 %3064 }
 0x4e3   : > { %v3067_v36 = vadd.f32 %v3066_v49, %v3065_v25 }
 0x4e5   : > { %v3068_v26 = vsel %vm3057_vm4, %v3067_v36, 0.0 }
 0x4e6   : > { %3069 = vst [vmem:[%s389_s21] sm:$0xff] %v3068_v26 }
 0x4e7 PF: > { %s21_s17 = sadd.s32 1, %s4437_s17  }
 0x4e8   : > { %p18_p5 = scmp.ge.s32.totalorder %s21_s17, 4  }
 0x4ea   :  { %20 = sbr.rel (!%p18_p5) target bundleno = 1 (0x1), region = 94 }

</bundles_post_ra>
